<compile_context>
chip_gen: v7x
topology: tpu7x:2x2x1
jax: 0.10.0
libtpu: 0.0.40
codegen_flags: <defaults>
</compile_context>

<pallas_src>
import functools

import jax
import jax.numpy as jnp
from jax.experimental import pallas as pl
from jax.experimental.pallas import tpu as pltpu

# ---- small RoBERTa-style backbone config (synthetic, deterministic init) ----
VOCAB = 100
MAX_POS = 64
HIDDEN = 32
HEADS = 2
HEAD_DIM = HIDDEN // HEADS
LAYERS = 2
INTER = 64
NUM_CLASSES1 = 2
NUM_CLASSES2 = 2
PAD_IDX = 1
LN_EPS = 1e-5

VEC_W = 3 * HIDDEN  # width of the packed bias/LN vector slab rows


# --------------------------- in-kernel helpers -------------------------------
def _ln(x, g, b):
    mu = jnp.mean(x, axis=-1, keepdims=True)
    xc = x - mu
    var = jnp.mean(xc * xc, axis=-1, keepdims=True)
    return xc * jax.lax.rsqrt(var + LN_EPS) * g + b


def _gelu(y):
    # TODO(synk): RoBERTa uses erf-based GELU; tanh approximation used in-kernel.
    return 0.5 * y * (1.0 + jnp.tanh(0.7978845608028654 * (y + 0.044715 * y * y * y)))


# --------------------------- single fused kernel ------------------------------
def _fused_forward_kernel(
    idx_ref,      # (BS, 2) int32: [:,0]=token id, [:,1]=VOCAB + position id
    maskf_ref,    # (B, S) float32 attention mask
    emb_ref,      # (VOCAB+MAX_POS, H) word||pos embedding table
    wqkv_ref,     # (L, H, 3H)
    wo_ref,       # (L, H, H)
    wffn_ref,     # (L, 2, H, INTER): [l,0]=W1, [l,1]=W2^T
    vec_ref,      # (4L+2, 3H) packed biases / LN params (layout in init_params)
    whead_ref,    # (H, H+NC1+NC2): [:, :H]=pooler W, [:, H:]=both classifier heads
    out_ref,      # (B, NC1+NC2)
    *, batch, seq,
):
    BS = batch * seq
    H = HIDDEN
    NC = NUM_CLASSES1 + NUM_CLASSES2
    scale = 1.0 / (HEAD_DIM ** 0.5)
    f32 = jnp.float32
    bf16 = jnp.bfloat16

    # ---- embeddings: one fused one-hot gather (word + position) on the MXU ----
    iota = jax.lax.broadcasted_iota(jnp.int32, (BS, VOCAB + MAX_POS), 1)
    tok = idx_ref[:, 0:1]                                  # (BS, 1)
    posv = idx_ref[:, 1:2]                                 # (BS, 1), already offset by VOCAB
    oh = jnp.logical_or(iota == tok, iota == posv).astype(bf16)
    x = jnp.dot(oh, emb_ref[...].astype(bf16), preferred_element_type=f32)   # (BS, H)
    gi = 4 * LAYERS                                        # global vec row
    x = x + vec_ref[gi:gi + 1, 0:H]                        # token-type embedding
    x = _ln(x, vec_ref[gi:gi + 1, H:2 * H], vec_ref[gi:gi + 1, 2 * H:3 * H])

    # additive attention mask, (B, 1, S) — CLS is always unmasked, no fully -1e9 row
    addmask = ((1.0 - maskf_ref[...]) * -1e9).reshape(batch, 1, seq)

    # ---- transformer layers (fully resident in VMEM / registers) ----
    for l in range(LAYERS):
        r = 4 * l
        wqkv = wqkv_ref[l].astype(bf16)                    # (H, 3H)
        qkv = jnp.dot(x.astype(bf16), wqkv, preferred_element_type=f32)
        qkv = qkv + vec_ref[r:r + 1, 0:3 * H]              # (BS, 3H)

        ctxs = []
        for h in range(HEADS):
            lo = h * HEAD_DIM
            hi = lo + HEAD_DIM
            qh = (qkv[:, lo:hi] * scale).reshape(batch, seq, HEAD_DIM).astype(bf16)
            kh = qkv[:, H + lo:H + hi].reshape(batch, seq, HEAD_DIM).astype(bf16)
            vh = qkv[:, 2 * H + lo:2 * H + hi].reshape(batch, seq, HEAD_DIM).astype(bf16)
            s = jnp.einsum('bqd,bkd->bqk', qh, kh, preferred_element_type=f32)
            s = s + addmask
            s = s - jnp.max(s, axis=-1, keepdims=True)
            p = jnp.exp(s)
            p = p / jnp.sum(p, axis=-1, keepdims=True)     # exact division (EUP has slack)
            ctxs.append(jnp.einsum('bqk,bkd->bqd', p.astype(bf16), vh,
                                   preferred_element_type=f32))
        # single merged output projection for all heads
        ctx = jnp.concatenate(ctxs, axis=-1).reshape(BS, H)
        attn = jnp.dot(ctx.astype(bf16), wo_ref[l].astype(bf16),
                       preferred_element_type=f32)
        attn = attn + vec_ref[r + 1:r + 2, 0:H]

        x = _ln(x + attn, vec_ref[r + 1:r + 2, H:2 * H], vec_ref[r + 1:r + 2, 2 * H:3 * H])

        # FFN: x @ W1 -> GELU -> @ W2 (stored transposed, NT dot)
        w1 = wffn_ref[l, 0].astype(bf16)                   # (H, INTER)
        w2t = wffn_ref[l, 1].astype(bf16)                  # (H, INTER) = W2^T
        ff = jnp.dot(x.astype(bf16), w1, preferred_element_type=f32)
        ff = _gelu(ff + vec_ref[r + 2:r + 3, 0:INTER])
        ff = jax.lax.dot_general(ff.astype(bf16), w2t, (((1,), (1,)), ((), ())),
                                 preferred_element_type=f32)
        ff = ff + vec_ref[r + 2:r + 3, INTER:INTER + H]
        x = _ln(x + ff, vec_ref[r + 3:r + 4, 0:H], vec_ref[r + 3:r + 4, H:2 * H])

    # ---- RoBERTa pooler (tanh of CLS projection) + concatenated task heads ----
    cls = x.reshape(batch, seq, H)[:, 0:1, :].reshape(batch, H)
    hb = gi + 1                                            # head-bias vec row
    wp = whead_ref[:, 0:H].astype(bf16)
    wc = whead_ref[:, H:H + NC].astype(bf16)
    pooled = jnp.tanh(jnp.dot(cls.astype(bf16), wp, preferred_element_type=f32)
                      + vec_ref[hb:hb + 1, 0:H])
    out_ref[...] = (jnp.dot(pooled.astype(bf16), wc, preferred_element_type=f32)
                    + vec_ref[hb:hb + 1, H:H + NC])


# --------------------------- parameter init -----------------------------------
def init_params(key):
    """Builds the packed parameter slabs directly (concatenation done once here)."""
    keys = jax.random.split(key, 16)
    _ctr = iter(range(16))

    def nrm(shape):
        return 0.02 * jax.random.normal(keys[next(_ctr)], shape, jnp.float32)

    word_emb = nrm((VOCAB, HIDDEN))
    pos_emb = nrm((MAX_POS, HIDDEN))
    type_emb = nrm((1, HIDDEN))
    emb_tab = jnp.concatenate([word_emb, pos_emb], axis=0)          # (164, 32)

    Wqkv = nrm((LAYERS, HIDDEN, 3 * HIDDEN))
    Wo = nrm((LAYERS, HIDDEN, HIDDEN))
    W1 = nrm((LAYERS, HIDDEN, INTER))
    W2 = nrm((LAYERS, INTER, HIDDEN))
    w_ffn = jnp.stack([W1, jnp.transpose(W2, (0, 2, 1))], axis=1)   # (L, 2, H, INTER)

    Wp = nrm((HIDDEN, HIDDEN))
    Wc = nrm((HIDDEN, NUM_CLASSES1 + NUM_CLASSES2))
    w_head = jnp.concatenate([Wp, Wc], axis=1)                      # (32, 36)

    zeros = lambda n: jnp.zeros((n,), jnp.float32)
    ones = lambda n: jnp.ones((n,), jnp.float32)

    def row(*parts):
        v = jnp.concatenate([p.reshape(-1) for p in parts])
        return jnp.pad(v, (0, VEC_W - v.shape[0]))

    # vec slab layout (rows of width 3H=96):
    #   per layer l: 4l+0: bqkv | 4l+1: [bo, ln1_g, ln1_b] | 4l+2: [b1, b2]
    #                4l+3: [ln2_g, ln2_b, pad]
    #   row 4L:   [type_emb, emb_ln_g, emb_ln_b]
    #   row 4L+1: [pooler_b, classifier_b(4), pad]
    rows = []
    for _ in range(LAYERS):
        rows.append(row(zeros(3 * HIDDEN)))                               # bqkv
        rows.append(row(zeros(HIDDEN), ones(HIDDEN), zeros(HIDDEN)))      # bo, ln1_g, ln1_b
        rows.append(row(zeros(INTER), zeros(HIDDEN)))                     # b1, b2
        rows.append(row(ones(HIDDEN), zeros(HIDDEN)))                     # ln2_g, ln2_b
    rows.append(row(type_emb.reshape(-1), ones(HIDDEN), zeros(HIDDEN)))   # emb LN params
    rows.append(row(zeros(HIDDEN), zeros(NUM_CLASSES1 + NUM_CLASSES2)))   # bp, bc
    vecs = jnp.stack(rows, axis=0)                                        # (10, 96)

    return {"emb_tab": emb_tab, "w_qkv": Wqkv, "w_out": Wo, "w_ffn": w_ffn,
            "vecs": vecs, "w_head": w_head}


# --------------------------- forward pass --------------------------------------
def multitask_forward(params, input_ids, attention_mask):
    B, S = input_ids.shape

    # RoBERTa-style position ids (padded tokens -> PAD_IDX); packed with token ids
    # into one small int32 input.
    mask_i = attention_mask.astype(jnp.int32)
    pos_ids = jnp.cumsum(mask_i, axis=1) * mask_i + PAD_IDX
    idx = jnp.stack([input_ids.astype(jnp.int32), pos_ids + VOCAB],
                    axis=-1).reshape(B * S, 2)
    maskf = attention_mask.astype(jnp.float32)

    args = (idx, maskf, params["emb_tab"], params["w_qkv"], params["w_out"],
            params["w_ffn"], params["vecs"], params["w_head"])

    vmem = lambda: pl.BlockSpec(memory_space=pltpu.MemorySpace.VMEM)

    logits = pl.pallas_call(
        functools.partial(_fused_forward_kernel, batch=B, seq=S),
        out_shape=jax.ShapeDtypeStruct((B, NUM_CLASSES1 + NUM_CLASSES2), jnp.float32),
        in_specs=[vmem() for _ in args],
        out_specs=vmem(),
    )(*args)
    # split the single lane-dense logits slab in the wrapper (free HBM slice)
    return logits[:, :NUM_CLASSES1], logits[:, NUM_CLASSES1:]


# --------------------------------- main -----------------------------------------
if __name__ == "__main__":
    key = jax.random.PRNGKey(0)
    pkey, ikey = jax.random.split(key)
    params = init_params(pkey)

    B, S = 2, 8
    input_ids = jax.random.randint(ikey, (B, S), 0, VOCAB)
    attention_mask = jnp.ones((B, S), dtype=jnp.int32).at[1, 6:].set(0)

    fwd = jax.jit(multitask_forward)
    logits1, logits2 = fwd(params, input_ids, attention_mask)
    jax.block_until_ready((logits1, logits2))

    assert logits1.shape == (B, NUM_CLASSES1)
    assert logits2.shape == (B, NUM_CLASSES2)
    assert logits1.dtype == jnp.float32 and logits2.dtype == jnp.float32
    print("KERNEL_OK")
</pallas_src>

<mosaic_0001>
module attributes {stable_mosaic.version = 11 : i64} {
  func.func @_fused_forward_kernel(%arg0: memref<16x2xi32, #tpu.memory_space<vmem>>, %arg1: memref<2x8xf32, #tpu.memory_space<vmem>>, %arg2: memref<164x32xf32, #tpu.memory_space<vmem>>, %arg3: memref<2x32x96xf32, #tpu.memory_space<vmem>>, %arg4: memref<2x32x32xf32, #tpu.memory_space<vmem>>, %arg5: memref<2x2x32x64xf32, #tpu.memory_space<vmem>>, %arg6: memref<10x96xf32, #tpu.memory_space<vmem>>, %arg7: memref<32x36xf32, #tpu.memory_space<vmem>>, %arg8: memref<2x4xf32, #tpu.memory_space<vmem>>) attributes {dimension_semantics = [], scalar_prefetch = 0 : i64, scratch_operands = 0 : i64, tpu.core_type = #tpu.core_type<tc>} {
    %0 = tpu.iota {dimensions = array<i32: 1>} : vector<16x164xi32>
    %c0 = arith.constant 0 : index
    %c0_0 = arith.constant 0 : index
    %1 = vector.load %arg0[%c0, %c0_0] : memref<16x2xi32, #tpu.memory_space<vmem>>, vector<16x1xi32>
    %c0_1 = arith.constant 0 : index
    %c1 = arith.constant 1 : index
    %2 = vector.load %arg0[%c0_1, %c1] : memref<16x2xi32, #tpu.memory_space<vmem>>, vector<16x1xi32>
    %3 = vector.broadcast %1 : vector<16x1xi32> to vector<16x164xi32>
    %4 = arith.cmpi eq, %0, %3 : vector<16x164xi32>
    %5 = vector.broadcast %2 : vector<16x1xi32> to vector<16x164xi32>
    %6 = arith.cmpi eq, %0, %5 : vector<16x164xi32>
    %7 = arith.ori %4, %6 : vector<16x164xi1>
    %8 = arith.extui %7 : vector<16x164xi1> to vector<16x164xi32>
    %9 = arith.sitofp %8 : vector<16x164xi32> to vector<16x164xf32>
    %10 = arith.truncf %9 : vector<16x164xf32> to vector<16x164xbf16>
    %c0_2 = arith.constant 0 : index
    %c0_3 = arith.constant 0 : index
    %11 = vector.load %arg2[%c0_2, %c0_3] : memref<164x32xf32, #tpu.memory_space<vmem>>, vector<164x32xf32>
    %12 = arith.truncf %11 : vector<164x32xf32> to vector<164x32xbf16>
    %cst = arith.constant dense<0.000000e+00> : vector<16x32xf32>
    %13 = tpu.matmul %10, %12, %cst {dimension_numbers = #tpu.dot_dimension_numbers<[1], [0], [0], [1], [0, 0, 1, 1], [], []>} : vector<16x164xbf16>, vector<164x32xbf16>, vector<16x32xf32> -> vector<16x32xf32>
    %c8 = arith.constant 8 : index
    %c0_4 = arith.constant 0 : index
    %14 = vector.load %arg6[%c8, %c0_4] : memref<10x96xf32, #tpu.memory_space<vmem>>, vector<1x32xf32>
    %15 = vector.broadcast %14 : vector<1x32xf32> to vector<16x32xf32>
    %16 = arith.addf %13, %15 : vector<16x32xf32>
    %c8_5 = arith.constant 8 : index
    %c32 = arith.constant 32 : index
    %17 = vector.load %arg6[%c8_5, %c32] : memref<10x96xf32, #tpu.memory_space<vmem>>, vector<1x32xf32>
    %c8_6 = arith.constant 8 : index
    %c64 = arith.constant 64 : index
    %18 = vector.load %arg6[%c8_6, %c64] : memref<10x96xf32, #tpu.memory_space<vmem>>, vector<1x32xf32>
    %cst_7 = arith.constant dense<0.000000e+00> : vector<16xf32>
    %19 = vector.multi_reduction <add>, %16, %cst_7 [1] : vector<16x32xf32> to vector<16xf32>
    %20 = vector.shape_cast %19 : vector<16xf32> to vector<16x1xf32>
    %cst_8 = arith.constant 3.200000e+01 : f32
    %21 = vector.broadcast %cst_8 : f32 to vector<16x1xf32>
    %22 = arith.divf %20, %21 : vector<16x1xf32>
    %23 = vector.broadcast %22 : vector<16x1xf32> to vector<16x32xf32>
    %24 = arith.subf %16, %23 : vector<16x32xf32>
    %25 = arith.mulf %24, %24 : vector<16x32xf32>
    %cst_9 = arith.constant dense<0.000000e+00> : vector<16xf32>
    %26 = vector.multi_reduction <add>, %25, %cst_9 [1] : vector<16x32xf32> to vector<16xf32>
    %27 = vector.shape_cast %26 : vector<16xf32> to vector<16x1xf32>
    %cst_10 = arith.constant 3.200000e+01 : f32
    %28 = vector.broadcast %cst_10 : f32 to vector<16x1xf32>
    %29 = arith.divf %27, %28 : vector<16x1xf32>
    %cst_11 = arith.constant 9.99999974E-6 : f32
    %30 = vector.broadcast %cst_11 : f32 to vector<16x1xf32>
    %31 = arith.addf %29, %30 : vector<16x1xf32>
    %32 = math.rsqrt %31 : vector<16x1xf32>
    %33 = vector.broadcast %32 : vector<16x1xf32> to vector<16x32xf32>
    %34 = arith.mulf %24, %33 : vector<16x32xf32>
    %35 = vector.broadcast %17 : vector<1x32xf32> to vector<16x32xf32>
    %36 = arith.mulf %34, %35 : vector<16x32xf32>
    %37 = vector.broadcast %18 : vector<1x32xf32> to vector<16x32xf32>
    %38 = arith.addf %36, %37 : vector<16x32xf32>
    %c0_12 = arith.constant 0 : index
    %c0_13 = arith.constant 0 : index
    %39 = vector.load %arg1[%c0_12, %c0_13] : memref<2x8xf32, #tpu.memory_space<vmem>>, vector<2x8xf32>
    %cst_14 = arith.constant 1.000000e+00 : f32
    %40 = vector.broadcast %cst_14 : f32 to vector<2x8xf32>
    %41 = arith.subf %40, %39 : vector<2x8xf32>
    %cst_15 = arith.constant -1.000000e+09 : f32
    %42 = vector.broadcast %cst_15 : f32 to vector<2x8xf32>
    %43 = arith.mulf %41, %42 : vector<2x8xf32>
    %44 = vector.shape_cast %43 : vector<2x8xf32> to vector<2x1x8xf32>
    %c0_16 = arith.constant 0 : index
    %c0_17 = arith.constant 0 : index
    %c0_18 = arith.constant 0 : index
    %45 = vector.load %arg3[%c0_16, %c0_17, %c0_18] : memref<2x32x96xf32, #tpu.memory_space<vmem>>, vector<1x32x96xf32>
    %46 = vector.shape_cast %45 : vector<1x32x96xf32> to vector<32x96xf32>
    %47 = arith.truncf %46 : vector<32x96xf32> to vector<32x96xbf16>
    %48 = arith.truncf %38 : vector<16x32xf32> to vector<16x32xbf16>
    %cst_19 = arith.constant dense<0.000000e+00> : vector<16x96xf32>
    %49 = tpu.matmul %48, %47, %cst_19 {dimension_numbers = #tpu.dot_dimension_numbers<[1], [0], [0], [1], [0, 0, 1, 1], [], []>} : vector<16x32xbf16>, vector<32x96xbf16>, vector<16x96xf32> -> vector<16x96xf32>
    %c0_20 = arith.constant 0 : index
    %c0_21 = arith.constant 0 : index
    %50 = vector.load %arg6[%c0_20, %c0_21] : memref<10x96xf32, #tpu.memory_space<vmem>>, vector<1x96xf32>
    %51 = vector.broadcast %50 : vector<1x96xf32> to vector<16x96xf32>
    %52 = arith.addf %49, %51 : vector<16x96xf32>
    %53 = vector.extract_strided_slice %52 {offsets = [0, 0], sizes = [16, 16], strides = [1, 1]} : vector<16x96xf32> to vector<16x16xf32>
    %cst_22 = arith.constant 2.500000e-01 : f32
    %54 = vector.broadcast %cst_22 : f32 to vector<16x16xf32>
    %55 = arith.mulf %53, %54 : vector<16x16xf32>
    %56 = vector.shape_cast %55 : vector<16x16xf32> to vector<2x8x16xf32>
    %57 = arith.truncf %56 : vector<2x8x16xf32> to vector<2x8x16xbf16>
    %58 = vector.extract_strided_slice %52 {offsets = [0, 32], sizes = [16, 16], strides = [1, 1]} : vector<16x96xf32> to vector<16x16xf32>
    %59 = vector.shape_cast %58 : vector<16x16xf32> to vector<2x8x16xf32>
    %60 = arith.truncf %59 : vector<2x8x16xf32> to vector<2x8x16xbf16>
    %61 = vector.extract_strided_slice %52 {offsets = [0, 64], sizes = [16, 16], strides = [1, 1]} : vector<16x96xf32> to vector<16x16xf32>
    %62 = vector.shape_cast %61 : vector<16x16xf32> to vector<2x8x16xf32>
    %63 = arith.truncf %62 : vector<2x8x16xf32> to vector<2x8x16xbf16>
    "tpu.trace_start"() <{level = 10 : i32, message = "bqd,bkd->bqk"}> : () -> ()
    %cst_23 = arith.constant dense<0.000000e+00> : vector<2x8x8xf32>
    %64 = tpu.matmul %57, %60, %cst_23 {dimension_numbers = #tpu.dot_dimension_numbers<[2], [2], [1], [1], [0, 0, 0, 1, 1, 1], [0], [0]>} : vector<2x8x16xbf16>, vector<2x8x16xbf16>, vector<2x8x8xf32> -> vector<2x8x8xf32>
    "tpu.trace_stop"() : () -> ()
    %65 = vector.broadcast %44 : vector<2x1x8xf32> to vector<2x8x8xf32>
    %66 = arith.addf %64, %65 : vector<2x8x8xf32>
    %cst_24 = arith.constant dense<0xFF800000> : vector<2x8xf32>
    %67 = vector.multi_reduction <maximumf>, %66, %cst_24 [2] : vector<2x8x8xf32> to vector<2x8xf32>
    %68 = vector.shape_cast %67 : vector<2x8xf32> to vector<2x8x1xf32>
    %69 = vector.broadcast %68 : vector<2x8x1xf32> to vector<2x8x8xf32>
    %70 = arith.subf %66, %69 : vector<2x8x8xf32>
    %71 = math.exp %70 : vector<2x8x8xf32>
    %cst_25 = arith.constant dense<0.000000e+00> : vector<2x8xf32>
    %72 = vector.multi_reduction <add>, %71, %cst_25 [2] : vector<2x8x8xf32> to vector<2x8xf32>
    %73 = vector.shape_cast %72 : vector<2x8xf32> to vector<2x8x1xf32>
    %74 = vector.broadcast %73 : vector<2x8x1xf32> to vector<2x8x8xf32>
    %75 = arith.divf %71, %74 : vector<2x8x8xf32>
    %76 = arith.truncf %75 : vector<2x8x8xf32> to vector<2x8x8xbf16>
    "tpu.trace_start"() <{level = 10 : i32, message = "bqk,bkd->bqd"}> : () -> ()
    %cst_26 = arith.constant dense<0.000000e+00> : vector<2x8x16xf32>
    %77 = tpu.matmul %76, %63, %cst_26 {dimension_numbers = #tpu.dot_dimension_numbers<[2], [1], [1], [2], [0, 0, 0, 1, 1, 2], [0], [0]>} : vector<2x8x8xbf16>, vector<2x8x16xbf16>, vector<2x8x16xf32> -> vector<2x8x16xf32>
    "tpu.trace_stop"() : () -> ()
    %78 = vector.extract_strided_slice %52 {offsets = [0, 16], sizes = [16, 16], strides = [1, 1]} : vector<16x96xf32> to vector<16x16xf32>
    %cst_27 = arith.constant 2.500000e-01 : f32
    %79 = vector.broadcast %cst_27 : f32 to vector<16x16xf32>
    %80 = arith.mulf %78, %79 : vector<16x16xf32>
    %81 = vector.shape_cast %80 : vector<16x16xf32> to vector<2x8x16xf32>
    %82 = arith.truncf %81 : vector<2x8x16xf32> to vector<2x8x16xbf16>
    %83 = vector.extract_strided_slice %52 {offsets = [0, 48], sizes = [16, 16], strides = [1, 1]} : vector<16x96xf32> to vector<16x16xf32>
    %84 = vector.shape_cast %83 : vector<16x16xf32> to vector<2x8x16xf32>
    %85 = arith.truncf %84 : vector<2x8x16xf32> to vector<2x8x16xbf16>
    %86 = vector.extract_strided_slice %52 {offsets = [0, 80], sizes = [16, 16], strides = [1, 1]} : vector<16x96xf32> to vector<16x16xf32>
    %87 = vector.shape_cast %86 : vector<16x16xf32> to vector<2x8x16xf32>
    %88 = arith.truncf %87 : vector<2x8x16xf32> to vector<2x8x16xbf16>
    "tpu.trace_start"() <{level = 10 : i32, message = "bqd,bkd->bqk"}> : () -> ()
    %cst_28 = arith.constant dense<0.000000e+00> : vector<2x8x8xf32>
    %89 = tpu.matmul %82, %85, %cst_28 {dimension_numbers = #tpu.dot_dimension_numbers<[2], [2], [1], [1], [0, 0, 0, 1, 1, 1], [0], [0]>} : vector<2x8x16xbf16>, vector<2x8x16xbf16>, vector<2x8x8xf32> -> vector<2x8x8xf32>
    "tpu.trace_stop"() : () -> ()
    %90 = vector.broadcast %44 : vector<2x1x8xf32> to vector<2x8x8xf32>
    %91 = arith.addf %89, %90 : vector<2x8x8xf32>
    %cst_29 = arith.constant dense<0xFF800000> : vector<2x8xf32>
    %92 = vector.multi_reduction <maximumf>, %91, %cst_29 [2] : vector<2x8x8xf32> to vector<2x8xf32>
    %93 = vector.shape_cast %92 : vector<2x8xf32> to vector<2x8x1xf32>
    %94 = vector.broadcast %93 : vector<2x8x1xf32> to vector<2x8x8xf32>
    %95 = arith.subf %91, %94 : vector<2x8x8xf32>
    %96 = math.exp %95 : vector<2x8x8xf32>
    %cst_30 = arith.constant dense<0.000000e+00> : vector<2x8xf32>
    %97 = vector.multi_reduction <add>, %96, %cst_30 [2] : vector<2x8x8xf32> to vector<2x8xf32>
    %98 = vector.shape_cast %97 : vector<2x8xf32> to vector<2x8x1xf32>
    %99 = vector.broadcast %98 : vector<2x8x1xf32> to vector<2x8x8xf32>
    %100 = arith.divf %96, %99 : vector<2x8x8xf32>
    %101 = arith.truncf %100 : vector<2x8x8xf32> to vector<2x8x8xbf16>
    "tpu.trace_start"() <{level = 10 : i32, message = "bqk,bkd->bqd"}> : () -> ()
    %cst_31 = arith.constant dense<0.000000e+00> : vector<2x8x16xf32>
    %102 = tpu.matmul %101, %88, %cst_31 {dimension_numbers = #tpu.dot_dimension_numbers<[2], [1], [1], [2], [0, 0, 0, 1, 1, 2], [0], [0]>} : vector<2x8x8xbf16>, vector<2x8x16xbf16>, vector<2x8x16xf32> -> vector<2x8x16xf32>
    "tpu.trace_stop"() : () -> ()
    %103 = tpu.concatenate %77, %102 in 2 : vector<2x8x16xf32>, vector<2x8x16xf32> -> vector<2x8x32xf32>
    %104 = vector.shape_cast %103 : vector<2x8x32xf32> to vector<16x32xf32>
    %105 = arith.truncf %104 : vector<16x32xf32> to vector<16x32xbf16>
    %c0_32 = arith.constant 0 : index
    %c0_33 = arith.constant 0 : index
    %c0_34 = arith.constant 0 : index
    %106 = vector.load %arg4[%c0_32, %c0_33, %c0_34] : memref<2x32x32xf32, #tpu.memory_space<vmem>>, vector<1x32x32xf32>
    %107 = vector.shape_cast %106 : vector<1x32x32xf32> to vector<32x32xf32>
    %108 = arith.truncf %107 : vector<32x32xf32> to vector<32x32xbf16>
    %cst_35 = arith.constant dense<0.000000e+00> : vector<16x32xf32>
    %109 = tpu.matmul %105, %108, %cst_35 {dimension_numbers = #tpu.dot_dimension_numbers<[1], [0], [0], [1], [0, 0, 1, 1], [], []>} : vector<16x32xbf16>, vector<32x32xbf16>, vector<16x32xf32> -> vector<16x32xf32>
    %c1_36 = arith.constant 1 : index
    %c0_37 = arith.constant 0 : index
    %110 = vector.load %arg6[%c1_36, %c0_37] : memref<10x96xf32, #tpu.memory_space<vmem>>, vector<1x32xf32>
    %111 = vector.broadcast %110 : vector<1x32xf32> to vector<16x32xf32>
    %112 = arith.addf %109, %111 : vector<16x32xf32>
    %113 = arith.addf %38, %112 : vector<16x32xf32>
    %c1_38 = arith.constant 1 : index
    %c32_39 = arith.constant 32 : index
    %114 = vector.load %arg6[%c1_38, %c32_39] : memref<10x96xf32, #tpu.memory_space<vmem>>, vector<1x32xf32>
    %c1_40 = arith.constant 1 : index
    %c64_41 = arith.constant 64 : index
    %115 = vector.load %arg6[%c1_40, %c64_41] : memref<10x96xf32, #tpu.memory_space<vmem>>, vector<1x32xf32>
    %cst_42 = arith.constant dense<0.000000e+00> : vector<16xf32>
    %116 = vector.multi_reduction <add>, %113, %cst_42 [1] : vector<16x32xf32> to vector<16xf32>
    %117 = vector.shape_cast %116 : vector<16xf32> to vector<16x1xf32>
    %cst_43 = arith.constant 3.200000e+01 : f32
    %118 = vector.broadcast %cst_43 : f32 to vector<16x1xf32>
    %119 = arith.divf %117, %118 : vector<16x1xf32>
    %120 = vector.broadcast %119 : vector<16x1xf32> to vector<16x32xf32>
    %121 = arith.subf %113, %120 : vector<16x32xf32>
    %122 = arith.mulf %121, %121 : vector<16x32xf32>
    %cst_44 = arith.constant dense<0.000000e+00> : vector<16xf32>
    %123 = vector.multi_reduction <add>, %122, %cst_44 [1] : vector<16x32xf32> to vector<16xf32>
    %124 = vector.shape_cast %123 : vector<16xf32> to vector<16x1xf32>
    %cst_45 = arith.constant 3.200000e+01 : f32
    %125 = vector.broadcast %cst_45 : f32 to vector<16x1xf32>
    %126 = arith.divf %124, %125 : vector<16x1xf32>
    %cst_46 = arith.constant 9.99999974E-6 : f32
    %127 = vector.broadcast %cst_46 : f32 to vector<16x1xf32>
    %128 = arith.addf %126, %127 : vector<16x1xf32>
    %129 = math.rsqrt %128 : vector<16x1xf32>
    %130 = vector.broadcast %129 : vector<16x1xf32> to vector<16x32xf32>
    %131 = arith.mulf %121, %130 : vector<16x32xf32>
    %132 = vector.broadcast %114 : vector<1x32xf32> to vector<16x32xf32>
    %133 = arith.mulf %131, %132 : vector<16x32xf32>
    %134 = vector.broadcast %115 : vector<1x32xf32> to vector<16x32xf32>
    %135 = arith.addf %133, %134 : vector<16x32xf32>
    %c0_47 = arith.constant 0 : index
    %c0_48 = arith.constant 0 : index
    %c0_49 = arith.constant 0 : index
    %c0_50 = arith.constant 0 : index
    %136 = vector.load %arg5[%c0_47, %c0_48, %c0_49, %c0_50] : memref<2x2x32x64xf32, #tpu.memory_space<vmem>>, vector<1x1x32x64xf32>
    %137 = vector.shape_cast %136 : vector<1x1x32x64xf32> to vector<32x64xf32>
    %138 = arith.truncf %137 : vector<32x64xf32> to vector<32x64xbf16>
    %c0_51 = arith.constant 0 : index
    %c1_52 = arith.constant 1 : index
    %c0_53 = arith.constant 0 : index
    %c0_54 = arith.constant 0 : index
    %139 = vector.load %arg5[%c0_51, %c1_52, %c0_53, %c0_54] : memref<2x2x32x64xf32, #tpu.memory_space<vmem>>, vector<1x1x32x64xf32>
    %140 = vector.shape_cast %139 : vector<1x1x32x64xf32> to vector<32x64xf32>
    %141 = arith.truncf %140 : vector<32x64xf32> to vector<32x64xbf16>
    %142 = arith.truncf %135 : vector<16x32xf32> to vector<16x32xbf16>
    %cst_55 = arith.constant dense<0.000000e+00> : vector<16x64xf32>
    %143 = tpu.matmul %142, %138, %cst_55 {dimension_numbers = #tpu.dot_dimension_numbers<[1], [0], [0], [1], [0, 0, 1, 1], [], []>} : vector<16x32xbf16>, vector<32x64xbf16>, vector<16x64xf32> -> vector<16x64xf32>
    %c2 = arith.constant 2 : index
    %c0_56 = arith.constant 0 : index
    %144 = vector.load %arg6[%c2, %c0_56] : memref<10x96xf32, #tpu.memory_space<vmem>>, vector<1x64xf32>
    %145 = vector.broadcast %144 : vector<1x64xf32> to vector<16x64xf32>
    %146 = arith.addf %143, %145 : vector<16x64xf32>
    %cst_57 = arith.constant 5.000000e-01 : f32
    %147 = vector.broadcast %cst_57 : f32 to vector<16x64xf32>
    %148 = arith.mulf %147, %146 : vector<16x64xf32>
    %cst_58 = arith.constant 4.471500e-02 : f32
    %149 = vector.broadcast %cst_58 : f32 to vector<16x64xf32>
    %150 = arith.mulf %149, %146 : vector<16x64xf32>
    %151 = arith.mulf %150, %146 : vector<16x64xf32>
    %152 = arith.mulf %151, %146 : vector<16x64xf32>
    %153 = arith.addf %146, %152 : vector<16x64xf32>
    %cst_59 = arith.constant 0.797884583 : f32
    %154 = vector.broadcast %cst_59 : f32 to vector<16x64xf32>
    %155 = arith.mulf %154, %153 : vector<16x64xf32>
    %156 = math.tanh %155 : vector<16x64xf32>
    %cst_60 = arith.constant 1.000000e+00 : f32
    %157 = vector.broadcast %cst_60 : f32 to vector<16x64xf32>
    %158 = arith.addf %157, %156 : vector<16x64xf32>
    %159 = arith.mulf %148, %158 : vector<16x64xf32>
    %160 = arith.truncf %159 : vector<16x64xf32> to vector<16x64xbf16>
    %cst_61 = arith.constant dense<0.000000e+00> : vector<16x32xf32>
    %161 = tpu.matmul %160, %141, %cst_61 {dimension_numbers = #tpu.dot_dimension_numbers<[1], [1], [0], [0], [0, 0, 1, 0], [], []>} : vector<16x64xbf16>, vector<32x64xbf16>, vector<16x32xf32> -> vector<16x32xf32>
    %c2_62 = arith.constant 2 : index
    %c64_63 = arith.constant 64 : index
    %162 = vector.load %arg6[%c2_62, %c64_63] : memref<10x96xf32, #tpu.memory_space<vmem>>, vector<1x32xf32>
    %163 = vector.broadcast %162 : vector<1x32xf32> to vector<16x32xf32>
    %164 = arith.addf %161, %163 : vector<16x32xf32>
    %165 = arith.addf %135, %164 : vector<16x32xf32>
    %c3 = arith.constant 3 : index
    %c0_64 = arith.constant 0 : index
    %166 = vector.load %arg6[%c3, %c0_64] : memref<10x96xf32, #tpu.memory_space<vmem>>, vector<1x32xf32>
    %c3_65 = arith.constant 3 : index
    %c32_66 = arith.constant 32 : index
    %167 = vector.load %arg6[%c3_65, %c32_66] : memref<10x96xf32, #tpu.memory_space<vmem>>, vector<1x32xf32>
    %cst_67 = arith.constant dense<0.000000e+00> : vector<16xf32>
    %168 = vector.multi_reduction <add>, %165, %cst_67 [1] : vector<16x32xf32> to vector<16xf32>
    %169 = vector.shape_cast %168 : vector<16xf32> to vector<16x1xf32>
    %cst_68 = arith.constant 3.200000e+01 : f32
    %170 = vector.broadcast %cst_68 : f32 to vector<16x1xf32>
    %171 = arith.divf %169, %170 : vector<16x1xf32>
    %172 = vector.broadcast %171 : vector<16x1xf32> to vector<16x32xf32>
    %173 = arith.subf %165, %172 : vector<16x32xf32>
    %174 = arith.mulf %173, %173 : vector<16x32xf32>
    %cst_69 = arith.constant dense<0.000000e+00> : vector<16xf32>
    %175 = vector.multi_reduction <add>, %174, %cst_69 [1] : vector<16x32xf32> to vector<16xf32>
    %176 = vector.shape_cast %175 : vector<16xf32> to vector<16x1xf32>
    %cst_70 = arith.constant 3.200000e+01 : f32
    %177 = vector.broadcast %cst_70 : f32 to vector<16x1xf32>
    %178 = arith.divf %176, %177 : vector<16x1xf32>
    %cst_71 = arith.constant 9.99999974E-6 : f32
    %179 = vector.broadcast %cst_71 : f32 to vector<16x1xf32>
    %180 = arith.addf %178, %179 : vector<16x1xf32>
    %181 = math.rsqrt %180 : vector<16x1xf32>
    %182 = vector.broadcast %181 : vector<16x1xf32> to vector<16x32xf32>
    %183 = arith.mulf %173, %182 : vector<16x32xf32>
    %184 = vector.broadcast %166 : vector<1x32xf32> to vector<16x32xf32>
    %185 = arith.mulf %183, %184 : vector<16x32xf32>
    %186 = vector.broadcast %167 : vector<1x32xf32> to vector<16x32xf32>
    %187 = arith.addf %185, %186 : vector<16x32xf32>
    %c1_72 = arith.constant 1 : index
    %c0_73 = arith.constant 0 : index
    %c0_74 = arith.constant 0 : index
    %188 = vector.load %arg3[%c1_72, %c0_73, %c0_74] : memref<2x32x96xf32, #tpu.memory_space<vmem>>, vector<1x32x96xf32>
    %189 = vector.shape_cast %188 : vector<1x32x96xf32> to vector<32x96xf32>
    %190 = arith.truncf %189 : vector<32x96xf32> to vector<32x96xbf16>
    %191 = arith.truncf %187 : vector<16x32xf32> to vector<16x32xbf16>
    %cst_75 = arith.constant dense<0.000000e+00> : vector<16x96xf32>
    %192 = tpu.matmul %191, %190, %cst_75 {dimension_numbers = #tpu.dot_dimension_numbers<[1], [0], [0], [1], [0, 0, 1, 1], [], []>} : vector<16x32xbf16>, vector<32x96xbf16>, vector<16x96xf32> -> vector<16x96xf32>
    %c4 = arith.constant 4 : index
    %c0_76 = arith.constant 0 : index
    %193 = vector.load %arg6[%c4, %c0_76] : memref<10x96xf32, #tpu.memory_space<vmem>>, vector<1x96xf32>
    %194 = vector.broadcast %193 : vector<1x96xf32> to vector<16x96xf32>
    %195 = arith.addf %192, %194 : vector<16x96xf32>
    %196 = vector.extract_strided_slice %195 {offsets = [0, 0], sizes = [16, 16], strides = [1, 1]} : vector<16x96xf32> to vector<16x16xf32>
    %cst_77 = arith.constant 2.500000e-01 : f32
    %197 = vector.broadcast %cst_77 : f32 to vector<16x16xf32>
    %198 = arith.mulf %196, %197 : vector<16x16xf32>
    %199 = vector.shape_cast %198 : vector<16x16xf32> to vector<2x8x16xf32>
    %200 = arith.truncf %199 : vector<2x8x16xf32> to vector<2x8x16xbf16>
    %201 = vector.extract_strided_slice %195 {offsets = [0, 32], sizes = [16, 16], strides = [1, 1]} : vector<16x96xf32> to vector<16x16xf32>
    %202 = vector.shape_cast %201 : vector<16x16xf32> to vector<2x8x16xf32>
    %203 = arith.truncf %202 : vector<2x8x16xf32> to vector<2x8x16xbf16>
    %204 = vector.extract_strided_slice %195 {offsets = [0, 64], sizes = [16, 16], strides = [1, 1]} : vector<16x96xf32> to vector<16x16xf32>
    %205 = vector.shape_cast %204 : vector<16x16xf32> to vector<2x8x16xf32>
    %206 = arith.truncf %205 : vector<2x8x16xf32> to vector<2x8x16xbf16>
    "tpu.trace_start"() <{level = 10 : i32, message = "bqd,bkd->bqk"}> : () -> ()
    %cst_78 = arith.constant dense<0.000000e+00> : vector<2x8x8xf32>
    %207 = tpu.matmul %200, %203, %cst_78 {dimension_numbers = #tpu.dot_dimension_numbers<[2], [2], [1], [1], [0, 0, 0, 1, 1, 1], [0], [0]>} : vector<2x8x16xbf16>, vector<2x8x16xbf16>, vector<2x8x8xf32> -> vector<2x8x8xf32>
    "tpu.trace_stop"() : () -> ()
    %208 = vector.broadcast %44 : vector<2x1x8xf32> to vector<2x8x8xf32>
    %209 = arith.addf %207, %208 : vector<2x8x8xf32>
    %cst_79 = arith.constant dense<0xFF800000> : vector<2x8xf32>
    %210 = vector.multi_reduction <maximumf>, %209, %cst_79 [2] : vector<2x8x8xf32> to vector<2x8xf32>
    %211 = vector.shape_cast %210 : vector<2x8xf32> to vector<2x8x1xf32>
    %212 = vector.broadcast %211 : vector<2x8x1xf32> to vector<2x8x8xf32>
    %213 = arith.subf %209, %212 : vector<2x8x8xf32>
    %214 = math.exp %213 : vector<2x8x8xf32>
    %cst_80 = arith.constant dense<0.000000e+00> : vector<2x8xf32>
    %215 = vector.multi_reduction <add>, %214, %cst_80 [2] : vector<2x8x8xf32> to vector<2x8xf32>
    %216 = vector.shape_cast %215 : vector<2x8xf32> to vector<2x8x1xf32>
    %217 = vector.broadcast %216 : vector<2x8x1xf32> to vector<2x8x8xf32>
    %218 = arith.divf %214, %217 : vector<2x8x8xf32>
    %219 = arith.truncf %218 : vector<2x8x8xf32> to vector<2x8x8xbf16>
    "tpu.trace_start"() <{level = 10 : i32, message = "bqk,bkd->bqd"}> : () -> ()
    %cst_81 = arith.constant dense<0.000000e+00> : vector<2x8x16xf32>
    %220 = tpu.matmul %219, %206, %cst_81 {dimension_numbers = #tpu.dot_dimension_numbers<[2], [1], [1], [2], [0, 0, 0, 1, 1, 2], [0], [0]>} : vector<2x8x8xbf16>, vector<2x8x16xbf16>, vector<2x8x16xf32> -> vector<2x8x16xf32>
    "tpu.trace_stop"() : () -> ()
    %221 = vector.extract_strided_slice %195 {offsets = [0, 16], sizes = [16, 16], strides = [1, 1]} : vector<16x96xf32> to vector<16x16xf32>
    %cst_82 = arith.constant 2.500000e-01 : f32
    %222 = vector.broadcast %cst_82 : f32 to vector<16x16xf32>
    %223 = arith.mulf %221, %222 : vector<16x16xf32>
    %224 = vector.shape_cast %223 : vector<16x16xf32> to vector<2x8x16xf32>
    %225 = arith.truncf %224 : vector<2x8x16xf32> to vector<2x8x16xbf16>
    %226 = vector.extract_strided_slice %195 {offsets = [0, 48], sizes = [16, 16], strides = [1, 1]} : vector<16x96xf32> to vector<16x16xf32>
    %227 = vector.shape_cast %226 : vector<16x16xf32> to vector<2x8x16xf32>
    %228 = arith.truncf %227 : vector<2x8x16xf32> to vector<2x8x16xbf16>
    %229 = vector.extract_strided_slice %195 {offsets = [0, 80], sizes = [16, 16], strides = [1, 1]} : vector<16x96xf32> to vector<16x16xf32>
    %230 = vector.shape_cast %229 : vector<16x16xf32> to vector<2x8x16xf32>
    %231 = arith.truncf %230 : vector<2x8x16xf32> to vector<2x8x16xbf16>
    "tpu.trace_start"() <{level = 10 : i32, message = "bqd,bkd->bqk"}> : () -> ()
    %cst_83 = arith.constant dense<0.000000e+00> : vector<2x8x8xf32>
    %232 = tpu.matmul %225, %228, %cst_83 {dimension_numbers = #tpu.dot_dimension_numbers<[2], [2], [1], [1], [0, 0, 0, 1, 1, 1], [0], [0]>} : vector<2x8x16xbf16>, vector<2x8x16xbf16>, vector<2x8x8xf32> -> vector<2x8x8xf32>
    "tpu.trace_stop"() : () -> ()
    %233 = vector.broadcast %44 : vector<2x1x8xf32> to vector<2x8x8xf32>
    %234 = arith.addf %232, %233 : vector<2x8x8xf32>
    %cst_84 = arith.constant dense<0xFF800000> : vector<2x8xf32>
    %235 = vector.multi_reduction <maximumf>, %234, %cst_84 [2] : vector<2x8x8xf32> to vector<2x8xf32>
    %236 = vector.shape_cast %235 : vector<2x8xf32> to vector<2x8x1xf32>
    %237 = vector.broadcast %236 : vector<2x8x1xf32> to vector<2x8x8xf32>
    %238 = arith.subf %234, %237 : vector<2x8x8xf32>
    %239 = math.exp %238 : vector<2x8x8xf32>
    %cst_85 = arith.constant dense<0.000000e+00> : vector<2x8xf32>
    %240 = vector.multi_reduction <add>, %239, %cst_85 [2] : vector<2x8x8xf32> to vector<2x8xf32>
    %241 = vector.shape_cast %240 : vector<2x8xf32> to vector<2x8x1xf32>
    %242 = vector.broadcast %241 : vector<2x8x1xf32> to vector<2x8x8xf32>
    %243 = arith.divf %239, %242 : vector<2x8x8xf32>
    %244 = arith.truncf %243 : vector<2x8x8xf32> to vector<2x8x8xbf16>
    "tpu.trace_start"() <{level = 10 : i32, message = "bqk,bkd->bqd"}> : () -> ()
    %cst_86 = arith.constant dense<0.000000e+00> : vector<2x8x16xf32>
    %245 = tpu.matmul %244, %231, %cst_86 {dimension_numbers = #tpu.dot_dimension_numbers<[2], [1], [1], [2], [0, 0, 0, 1, 1, 2], [0], [0]>} : vector<2x8x8xbf16>, vector<2x8x16xbf16>, vector<2x8x16xf32> -> vector<2x8x16xf32>
    "tpu.trace_stop"() : () -> ()
    %246 = tpu.concatenate %220, %245 in 2 : vector<2x8x16xf32>, vector<2x8x16xf32> -> vector<2x8x32xf32>
    %247 = vector.shape_cast %246 : vector<2x8x32xf32> to vector<16x32xf32>
    %248 = arith.truncf %247 : vector<16x32xf32> to vector<16x32xbf16>
    %c1_87 = arith.constant 1 : index
    %c0_88 = arith.constant 0 : index
    %c0_89 = arith.constant 0 : index
    %249 = vector.load %arg4[%c1_87, %c0_88, %c0_89] : memref<2x32x32xf32, #tpu.memory_space<vmem>>, vector<1x32x32xf32>
    %250 = vector.shape_cast %249 : vector<1x32x32xf32> to vector<32x32xf32>
    %251 = arith.truncf %250 : vector<32x32xf32> to vector<32x32xbf16>
    %cst_90 = arith.constant dense<0.000000e+00> : vector<16x32xf32>
    %252 = tpu.matmul %248, %251, %cst_90 {dimension_numbers = #tpu.dot_dimension_numbers<[1], [0], [0], [1], [0, 0, 1, 1], [], []>} : vector<16x32xbf16>, vector<32x32xbf16>, vector<16x32xf32> -> vector<16x32xf32>
    %c5 = arith.constant 5 : index
    %c0_91 = arith.constant 0 : index
    %253 = vector.load %arg6[%c5, %c0_91] : memref<10x96xf32, #tpu.memory_space<vmem>>, vector<1x32xf32>
    %254 = vector.broadcast %253 : vector<1x32xf32> to vector<16x32xf32>
    %255 = arith.addf %252, %254 : vector<16x32xf32>
    %256 = arith.addf %187, %255 : vector<16x32xf32>
    %c5_92 = arith.constant 5 : index
    %c32_93 = arith.constant 32 : index
    %257 = vector.load %arg6[%c5_92, %c32_93] : memref<10x96xf32, #tpu.memory_space<vmem>>, vector<1x32xf32>
    %c5_94 = arith.constant 5 : index
    %c64_95 = arith.constant 64 : index
    %258 = vector.load %arg6[%c5_94, %c64_95] : memref<10x96xf32, #tpu.memory_space<vmem>>, vector<1x32xf32>
    %cst_96 = arith.constant dense<0.000000e+00> : vector<16xf32>
    %259 = vector.multi_reduction <add>, %256, %cst_96 [1] : vector<16x32xf32> to vector<16xf32>
    %260 = vector.shape_cast %259 : vector<16xf32> to vector<16x1xf32>
    %cst_97 = arith.constant 3.200000e+01 : f32
    %261 = vector.broadcast %cst_97 : f32 to vector<16x1xf32>
    %262 = arith.divf %260, %261 : vector<16x1xf32>
    %263 = vector.broadcast %262 : vector<16x1xf32> to vector<16x32xf32>
    %264 = arith.subf %256, %263 : vector<16x32xf32>
    %265 = arith.mulf %264, %264 : vector<16x32xf32>
    %cst_98 = arith.constant dense<0.000000e+00> : vector<16xf32>
    %266 = vector.multi_reduction <add>, %265, %cst_98 [1] : vector<16x32xf32> to vector<16xf32>
    %267 = vector.shape_cast %266 : vector<16xf32> to vector<16x1xf32>
    %cst_99 = arith.constant 3.200000e+01 : f32
    %268 = vector.broadcast %cst_99 : f32 to vector<16x1xf32>
    %269 = arith.divf %267, %268 : vector<16x1xf32>
    %cst_100 = arith.constant 9.99999974E-6 : f32
    %270 = vector.broadcast %cst_100 : f32 to vector<16x1xf32>
    %271 = arith.addf %269, %270 : vector<16x1xf32>
    %272 = math.rsqrt %271 : vector<16x1xf32>
    %273 = vector.broadcast %272 : vector<16x1xf32> to vector<16x32xf32>
    %274 = arith.mulf %264, %273 : vector<16x32xf32>
    %275 = vector.broadcast %257 : vector<1x32xf32> to vector<16x32xf32>
    %276 = arith.mulf %274, %275 : vector<16x32xf32>
    %277 = vector.broadcast %258 : vector<1x32xf32> to vector<16x32xf32>
    %278 = arith.addf %276, %277 : vector<16x32xf32>
    %c1_101 = arith.constant 1 : index
    %c0_102 = arith.constant 0 : index
    %c0_103 = arith.constant 0 : index
    %c0_104 = arith.constant 0 : index
    %279 = vector.load %arg5[%c1_101, %c0_102, %c0_103, %c0_104] : memref<2x2x32x64xf32, #tpu.memory_space<vmem>>, vector<1x1x32x64xf32>
    %280 = vector.shape_cast %279 : vector<1x1x32x64xf32> to vector<32x64xf32>
    %281 = arith.truncf %280 : vector<32x64xf32> to vector<32x64xbf16>
    %c1_105 = arith.constant 1 : index
    %c1_106 = arith.constant 1 : index
    %c0_107 = arith.constant 0 : index
    %c0_108 = arith.constant 0 : index
    %282 = vector.load %arg5[%c1_105, %c1_106, %c0_107, %c0_108] : memref<2x2x32x64xf32, #tpu.memory_space<vmem>>, vector<1x1x32x64xf32>
    %283 = vector.shape_cast %282 : vector<1x1x32x64xf32> to vector<32x64xf32>
    %284 = arith.truncf %283 : vector<32x64xf32> to vector<32x64xbf16>
    %285 = arith.truncf %278 : vector<16x32xf32> to vector<16x32xbf16>
    %cst_109 = arith.constant dense<0.000000e+00> : vector<16x64xf32>
    %286 = tpu.matmul %285, %281, %cst_109 {dimension_numbers = #tpu.dot_dimension_numbers<[1], [0], [0], [1], [0, 0, 1, 1], [], []>} : vector<16x32xbf16>, vector<32x64xbf16>, vector<16x64xf32> -> vector<16x64xf32>
    %c6 = arith.constant 6 : index
    %c0_110 = arith.constant 0 : index
    %287 = vector.load %arg6[%c6, %c0_110] : memref<10x96xf32, #tpu.memory_space<vmem>>, vector<1x64xf32>
    %288 = vector.broadcast %287 : vector<1x64xf32> to vector<16x64xf32>
    %289 = arith.addf %286, %288 : vector<16x64xf32>
    %cst_111 = arith.constant 5.000000e-01 : f32
    %290 = vector.broadcast %cst_111 : f32 to vector<16x64xf32>
    %291 = arith.mulf %290, %289 : vector<16x64xf32>
    %cst_112 = arith.constant 4.471500e-02 : f32
    %292 = vector.broadcast %cst_112 : f32 to vector<16x64xf32>
    %293 = arith.mulf %292, %289 : vector<16x64xf32>
    %294 = arith.mulf %293, %289 : vector<16x64xf32>
    %295 = arith.mulf %294, %289 : vector<16x64xf32>
    %296 = arith.addf %289, %295 : vector<16x64xf32>
    %cst_113 = arith.constant 0.797884583 : f32
    %297 = vector.broadcast %cst_113 : f32 to vector<16x64xf32>
    %298 = arith.mulf %297, %296 : vector<16x64xf32>
    %299 = math.tanh %298 : vector<16x64xf32>
    %cst_114 = arith.constant 1.000000e+00 : f32
    %300 = vector.broadcast %cst_114 : f32 to vector<16x64xf32>
    %301 = arith.addf %300, %299 : vector<16x64xf32>
    %302 = arith.mulf %291, %301 : vector<16x64xf32>
    %303 = arith.truncf %302 : vector<16x64xf32> to vector<16x64xbf16>
    %cst_115 = arith.constant dense<0.000000e+00> : vector<16x32xf32>
    %304 = tpu.matmul %303, %284, %cst_115 {dimension_numbers = #tpu.dot_dimension_numbers<[1], [1], [0], [0], [0, 0, 1, 0], [], []>} : vector<16x64xbf16>, vector<32x64xbf16>, vector<16x32xf32> -> vector<16x32xf32>
    %c6_116 = arith.constant 6 : index
    %c64_117 = arith.constant 64 : index
    %305 = vector.load %arg6[%c6_116, %c64_117] : memref<10x96xf32, #tpu.memory_space<vmem>>, vector<1x32xf32>
    %306 = vector.broadcast %305 : vector<1x32xf32> to vector<16x32xf32>
    %307 = arith.addf %304, %306 : vector<16x32xf32>
    %308 = arith.addf %278, %307 : vector<16x32xf32>
    %c7 = arith.constant 7 : index
    %c0_118 = arith.constant 0 : index
    %309 = vector.load %arg6[%c7, %c0_118] : memref<10x96xf32, #tpu.memory_space<vmem>>, vector<1x32xf32>
    %c7_119 = arith.constant 7 : index
    %c32_120 = arith.constant 32 : index
    %310 = vector.load %arg6[%c7_119, %c32_120] : memref<10x96xf32, #tpu.memory_space<vmem>>, vector<1x32xf32>
    %cst_121 = arith.constant dense<0.000000e+00> : vector<16xf32>
    %311 = vector.multi_reduction <add>, %308, %cst_121 [1] : vector<16x32xf32> to vector<16xf32>
    %312 = vector.shape_cast %311 : vector<16xf32> to vector<16x1xf32>
    %cst_122 = arith.constant 3.200000e+01 : f32
    %313 = vector.broadcast %cst_122 : f32 to vector<16x1xf32>
    %314 = arith.divf %312, %313 : vector<16x1xf32>
    %315 = vector.broadcast %314 : vector<16x1xf32> to vector<16x32xf32>
    %316 = arith.subf %308, %315 : vector<16x32xf32>
    %317 = arith.mulf %316, %316 : vector<16x32xf32>
    %cst_123 = arith.constant dense<0.000000e+00> : vector<16xf32>
    %318 = vector.multi_reduction <add>, %317, %cst_123 [1] : vector<16x32xf32> to vector<16xf32>
    %319 = vector.shape_cast %318 : vector<16xf32> to vector<16x1xf32>
    %cst_124 = arith.constant 3.200000e+01 : f32
    %320 = vector.broadcast %cst_124 : f32 to vector<16x1xf32>
    %321 = arith.divf %319, %320 : vector<16x1xf32>
    %cst_125 = arith.constant 9.99999974E-6 : f32
    %322 = vector.broadcast %cst_125 : f32 to vector<16x1xf32>
    %323 = arith.addf %321, %322 : vector<16x1xf32>
    %324 = math.rsqrt %323 : vector<16x1xf32>
    %325 = vector.broadcast %324 : vector<16x1xf32> to vector<16x32xf32>
    %326 = arith.mulf %316, %325 : vector<16x32xf32>
    %327 = vector.broadcast %309 : vector<1x32xf32> to vector<16x32xf32>
    %328 = arith.mulf %326, %327 : vector<16x32xf32>
    %329 = vector.broadcast %310 : vector<1x32xf32> to vector<16x32xf32>
    %330 = arith.addf %328, %329 : vector<16x32xf32>
    %331 = vector.shape_cast %330 : vector<16x32xf32> to vector<2x8x32xf32>
    %332 = vector.extract_strided_slice %331 {offsets = [0, 0, 0], sizes = [2, 1, 32], strides = [1, 1, 1]} : vector<2x8x32xf32> to vector<2x1x32xf32>
    %333 = vector.shape_cast %332 : vector<2x1x32xf32> to vector<2x32xf32>
    %c0_126 = arith.constant 0 : index
    %c0_127 = arith.constant 0 : index
    %334 = vector.load %arg7[%c0_126, %c0_127] : memref<32x36xf32, #tpu.memory_space<vmem>>, vector<32x32xf32>
    %335 = arith.truncf %334 : vector<32x32xf32> to vector<32x32xbf16>
    %c0_128 = arith.constant 0 : index
    %c32_129 = arith.constant 32 : index
    %336 = vector.load %arg7[%c0_128, %c32_129] : memref<32x36xf32, #tpu.memory_space<vmem>>, vector<32x4xf32>
    %337 = arith.truncf %336 : vector<32x4xf32> to vector<32x4xbf16>
    %338 = arith.truncf %333 : vector<2x32xf32> to vector<2x32xbf16>
    %cst_130 = arith.constant dense<0.000000e+00> : vector<2x32xf32>
    %339 = tpu.matmul %338, %335, %cst_130 {dimension_numbers = #tpu.dot_dimension_numbers<[1], [0], [0], [1], [0, 0, 1, 1], [], []>} : vector<2x32xbf16>, vector<32x32xbf16>, vector<2x32xf32> -> vector<2x32xf32>
    %c9 = arith.constant 9 : index
    %c0_131 = arith.constant 0 : index
    %340 = vector.load %arg6[%c9, %c0_131] : memref<10x96xf32, #tpu.memory_space<vmem>>, vector<1x32xf32>
    %341 = vector.broadcast %340 : vector<1x32xf32> to vector<2x32xf32>
    %342 = arith.addf %339, %341 : vector<2x32xf32>
    %343 = math.tanh %342 : vector<2x32xf32>
    %344 = arith.truncf %343 : vector<2x32xf32> to vector<2x32xbf16>
    %cst_132 = arith.constant dense<0.000000e+00> : vector<2x4xf32>
    %345 = tpu.matmul %344, %337, %cst_132 {dimension_numbers = #tpu.dot_dimension_numbers<[1], [0], [0], [1], [0, 0, 1, 1], [], []>} : vector<2x32xbf16>, vector<32x4xbf16>, vector<2x4xf32> -> vector<2x4xf32>
    %c9_133 = arith.constant 9 : index
    %c32_134 = arith.constant 32 : index
    %346 = vector.load %arg6[%c9_133, %c32_134] : memref<10x96xf32, #tpu.memory_space<vmem>>, vector<1x4xf32>
    %347 = vector.broadcast %346 : vector<1x4xf32> to vector<2x4xf32>
    %348 = arith.addf %345, %347 : vector<2x4xf32>
    %c0_135 = arith.constant 0 : index
    %c0_136 = arith.constant 0 : index
    %349 = vector.load %arg8[%c0_135, %c0_136] : memref<2x4xf32, #tpu.memory_space<vmem>>, vector<2x4xf32>
    tpu.vector_store %arg8[%c0_135, %c0_136], %348 {strides = array<i32>} : memref<2x4xf32, #tpu.memory_space<vmem>>, vector<2x4xf32>,
    return
  }
}

</mosaic_0001>

<bundles_post_ra>
// kernel: multitask_forward.1
= control target key start
LH: loop header
LB: loop body
LE: loop exit
PB: predicated region body
PF: predicated region fallthrough
CT: control target
= control target key end

     0   :  { %13 = vsyncpa [#allocation3], 0  ;;  %s2362_s27 = smov [#allocation2]   ;;  %s2910_s0 = inlined_call_operand.vmem [shape: s32[16,2], index: 0, kind: input, shape index: {}]   ;;  %s2911_s1 = inlined_call_operand.vmem [shape: f32[2,8], index: 1, kind: input, shape index: {}]   ;;  %s2912_s2 = inlined_call_operand.vmem [shape: f32[164,32], index: 2, kind: input, shape index: {}]   ;;  %s2913_s3 = inlined_call_operand.vmem [shape: f32[2,32,96], index: 3, kind: input, shape index: {}]   ;;  %s2914_s4 = inlined_call_operand.vmem [shape: f32[2,32,32], index: 4, kind: input, shape index: {}]   ;;  %s2915_s5 = inlined_call_operand.vmem [shape: f32[2,2,32,64], index: 5, kind: input, shape index: {}]   ;;  %s2916_s6 = inlined_call_operand.hbm [shape: f32[10,96], index: 6, kind: input, shape index: {}]   ;;  %s2917_s7 = inlined_call_operand.vmem [shape: f32[32,36], index: 7, kind: input, shape index: {}]   ;;  %s2918_s8 = inlined_call_operand.vmem [shape: f32[2,4], index: 8, kind: output, shape index: {}]  }
   0x1   :  { %s31_s28 = sshll.u32 %s2362_s27, 4  ;;  %s2338_s9 = scalar_lea.hbm %s2916_s6, 256  ;;  %s32_s28 = int_to_ptr.vmem [resolvable:$true] %s31_s28 }
   0x2   :  { %p2339_p0 = scmp.ne.s32.totalorder %s2916_s6, %s2338_s9  ;;  %p2342_p1 = scmp.lt.u32.totalorder %s2338_s9, %s2916_s6 }
   0x4   :  { %p2344_p2 = pnand %p2342_p1, %p2339_p0 }
   0x6   :  { %2347 = shalt.err (!%p2344_p2)
}
   0x7   :  { %s2348_s14 = scalar_lea.vmem %s32_s28, 256  ;;  %p2353_p4 = scmp.lt.s32.totalorder %s32_s28, %s32_s28 }
   0x8   :  { %p2349_p3 = scmp.ne.s32.totalorder %s32_s28, %s2348_s14  ;;  %p2354_p5 = scmp.lt.s32.totalorder %s2348_s14, %s2348_s14 }
   0xa   :  { %p2355_p6 = por %p2354_p5, %p2353_p4 }
   0xc   :  { %p2356_p7 = pnand %p2355_p6, %p2349_p3 }
   0xe   :  { %2359 = shalt.err (!%p2356_p7)
}
   0xf   :  { %s2363_s15 = smov 128   ;;  %s2364_s16 = smov 8  }
  0x10   :  { %37 = dma.hbm_to_vmem [thread:$0]  %s2916_s6, 256, %s32_s28, [#allocation3], %s2363_s15, %s2363_s15, %s2364_s16  }
  0x11   :  { %2360 = dma.done.wait [#allocation3], 256  }
  0x12   :  { %2361 = vsyncadd [#allocation3], 4294967040  ;;  %v2365_v0 = vmov 1   ;;  %v2366_v1 = vmov 0   ;;  %v47_v2 = vld [vmem:[%s2910_s0] sm:$0xff]  ;;  %v84_v4 = vld [vmem:[%s2912_s2 + $0x8] sm:$0xff]  ;;  %v44_v38 = vlaneseq }
  0x13   :  { %2264 = vset.pattern.permute.xlu1 %v2365_v0  ;;  %2263 = vset.pattern.permute.xlu0 %v2366_v1  ;;  %v83_v3 = vld [vmem:[%s2912_s2] sm:$0xff]  ;;  %v85_v5 = vld [vmem:[%s2912_s2 + $0x10] sm:$0xff]  ;;  %v86_v6 = vld [vmem:[%s2912_s2 + $0x18] sm:$0xff]  ;;  %v2367_v10 = vmov 0.0   ;;  %vm124_vm0 = vcmask 1041408   ;;  %vm120_vm12 = vcmask 293888  }
  0x14   :  { %128 = vmatprep.subr.bf16.mxu0 %v2366_v1  ;;  %60 = vperm.xlu1 %2264, %v47_v2   ;;  %v48_v7 = vld [vmem:[%s2910_s0 + $0x8] sm:$0xff]  ;;  %v104_v8 = vpack.c.bf16 %v84_v4, %v83_v3  ;;  %v105_v9 = vpack.c.bf16 %v86_v6, %v85_v5  ;;  %v87_v11 = vld [vmem:[%s2912_s2 + $0x20] sm:$0xff]  ;;  %v89_v14 = vld [vmem:[%s2912_s2 + $0x30] sm:$0xff]  ;;  %v45_v39 = vand.u32 127, %v44_v38  ;;  %v2368_v48 = vmov 1.0|1.0  }
  0x15   :  { %50 = vperm.xlu0 %2263, %v47_v2   ;;  %2072 = vmatprep.subr.bf16.mxu1 %v2367_v10  ;;  %v88_v12 = vld [vmem:[%s2912_s2 + $0x28] sm:$0xff]  ;;  %v90_v15 = vld [vmem:[%s2912_s2 + $0x38] sm:$0xff]  ;;  %v91_v17 = vld [vmem:[%s2912_s2 + $0x40] sm:$0xff]  ;;  %vm169_vm15 = vcmask 261120   ;;  %s2370_s17 = smov 64   ;;  %s2374_s27 = smov 112  }
  0x16   :  { %129 = vmatpush1.bf16.msra.mxu0 %v104_v8  ;;  %v106_v13 = vpack.c.bf16 %v88_v12, %v87_v11  ;;  %v107_v16 = vpack.c.bf16 %v90_v15, %v89_v14  ;;  %v92_v18 = vld [vmem:[%s2912_s2 + $0x48] sm:$0xff]  ;;  %v93_v20 = vld [vmem:[%s2912_s2 + $0x50] sm:$0xff]  ;;  %v94_v21 = vld [vmem:[%s2912_s2 + $0x58] sm:$0xff]  ;;  %v46_v40 = vadd.s32 128, %v45_v39  ;;  %s2375_s28 = smov 48   ;;  %s2376_s14 = smov 16  }
  0x17   :  { %130 = vmatprep.subr.bf16.mxu0 %v2366_v1  ;;  %v108_v19 = vpack.c.bf16 %v92_v18, %v91_v17  ;;  %v109_v22 = vpack.c.bf16 %v94_v21, %v93_v20  ;;  %v95_v23 = vld [vmem:[%s2912_s2 + $0x60] sm:$0xff]  ;;  %v96_v24 = vld [vmem:[%s2912_s2 + $0x68] sm:$0xff]  ;;  %v97_v26 = vld [vmem:[%s2912_s2 + $0x70] sm:$0xff] }
  0x18   :  { %63 = vperm.xlu1 %2264, %v48_v7   ;;  %v110_v25 = vpack.c.bf16 %v96_v24, %v95_v23  ;;  %v98_v27 = vld [vmem:[%s2912_s2 + $0x78] sm:$0xff]  ;;  %v99_v29 = vld [vmem:[%s2912_s2 + $0x80] sm:$0xff]  ;;  %v100_v30 = vld [vmem:[%s2912_s2 + $0x88] sm:$0xff] }
  0x19   :  { %53 = vperm.xlu0 %2263, %v48_v7   ;;  %v111_v28 = vpack.c.bf16 %v98_v27, %v97_v26  ;;  %v112_v31 = vpack.c.bf16 %v100_v30, %v99_v29  ;;  %v101_v32 = vld [vmem:[%s2912_s2 + $0x90] sm:$0xff]  ;;  %v102_v33 = vld [vmem:[%s2912_s2 + $0x98] sm:$0xff]  ;;  %v103_v34 = vld [vmem:[%s2912_s2 + $0xa0] sm:$0xf]  ;;  %s2369_s2 = smov 96  }
  0x1a   :  { %131 = vmatpush1.bf16.msra.mxu0 %v105_v9  ;;  %v113_v35 = vpack.c.bf16 %v102_v33, %v101_v32  ;;  %v114_v36 = vpack.c.bf16 %v103_v34, %v103_v34  ;;  %v1951_v49 = vld [vmem:[#allocation2 + $0x8] ss:$0 sm:$0xff]  ;;  %v234_v4 = vld [vmem:[%s2913_s3] sm:$0xff]  ;;  %v236_v7 = vld [vmem:[%s2913_s3 + $0x10] sm:$0xff] }
  0x1b   :  { %132 = vmatprep.subr.bf16.mxu0 %v2366_v1  ;;  %v235_v5 = vld [vmem:[%s2913_s3 + $0x8] sm:$0xff]  ;;  %v237_v8 = vld [vmem:[%s2913_s3 + $0x18] sm:$0xff] }
  0x1c   :  { %v126_v37 = vsel %vm124_vm0, %v114_v36, 0  ;;  %v238_v6 = vpack.c.bf16 %v235_v5, %v234_v4  ;;  %v239_v9 = vpack.c.bf16 %v237_v8, %v236_v7  ;;  %vm2371_vm0 = vmmov 0  }
  0x1d   :  { %2275 = vset.pattern.permute.xlu0 %v2365_v0  ;;  %2076 = vmatprep.mubr.msk.bf16.mxu1 %vm2371_vm0, %v2367_v10 }
  0x1e   :  { %133 = vmatpush1.bf16.msra.mxu0 %v106_v13  ;;  %2073 = vmatpush3.bf16.msra.mxu1 %v238_v6 }
  0x1f   :  { %134 = vmatprep.subr.bf16.mxu0 %v2366_v1  ;;  %2074 = vmatprep.subr.bf16.mxu1 %v2367_v10 }
  0x22   :  { %135 = vmatpush1.bf16.msra.mxu0 %v107_v16  ;;  %2075 = vmatpush3.bf16.msra.mxu1 %v239_v9 }
  0x23   :  { %136 = vmatprep.subr.bf16.mxu0 %v2366_v1  ;;  %2080 = vmatprep.subr.bf16.mxu1 %v2367_v10 }
  0x26   :  { %137 = vmatpush1.bf16.msra.mxu0 %v108_v19 }
  0x27   :  { %138 = vmatprep.subr.bf16.mxu0 %v2366_v1 }
  0x2a   :  { %139 = vmatpush1.bf16.msra.mxu0 %v109_v22 }
  0x2b   :  { %140 = vmatprep.subr.bf16.mxu0 %v2366_v1 }
  0x2e   :  { %141 = vmatpush1.bf16.msra.mxu0 %v110_v25 }
  0x2f   :  { %142 = vmatprep.subr.bf16.mxu0 %v2366_v1 }
  0x32   :  { %143 = vmatpush1.bf16.msra.mxu0 %v111_v28  ;;  %v1955_v28 = vld [vmem:[#allocation2] ss:$0 sm:$0xff] }
  0x33   :  { %144 = vmatprep.subr.bf16.mxu0 %v2366_v1 }
  0x36   :  { %145 = vmatpush1.bf16.msra.mxu0 %v112_v31 }
  0x37   :  { %146 = vmatprep.subr.bf16.mxu0 %v2366_v1 }
  0x3a   :  { %147 = vmatpush1.bf16.msra.mxu0 %v113_v35 }
  0x3b   :  { %148 = vmatprep.subr.bf16.mxu0 %v2366_v1 }
  0x3e   :  { %149 = vmatpush1.bf16.msra.mxu0 %v126_v37 }
  0x3f   :  { %2110 = vmatprep.subr.bf16.mxu0 %v2367_v10 }
  0x93   :  { %v61_v41 = vpop.permute.xlu1 %60 }
  0x94   :  { %v51_v42 = vpop.permute.xlu0 %50  ;;  %vm66_vm1 = vcmp.eq.s32.totalorder %v46_v40, %v61_v41  ;;  %vm65_vm8 = vcmp.eq.s32.totalorder %v45_v39, %v61_v41 }
  0x95   :  { %vm56_vm2 = vcmp.eq.s32.totalorder %v46_v40, %v51_v42  ;;  %vm55_vm9 = vcmp.eq.s32.totalorder %v45_v39, %v51_v42 }
  0x96   :  { %vm70_vm3 = vmor %vm56_vm2, %vm66_vm1  ;;  %vm309_vm1 = vcmask 130048   ;;  %vm405_vm2 = vcmask 64512  }
  0x97   :  { %v64_v43 = vpop.permute.xlu1 %63  ;;  %v1948_v45 = vsel %vm70_vm3, 1.0, %v2367_v10  ;;  %vm69_vm13 = vmor %vm55_vm9, %vm65_vm8  ;;  %vm435_vm3 = vcmask 1043456  }
  0x98   :  { %v54_v44 = vpop.permute.xlu0 %53  ;;  %vm67_vm4 = vcmp.eq.s32.totalorder %v45_v39, %v64_v43  ;;  %vm68_vm5 = vcmp.eq.s32.totalorder %v46_v40, %v64_v43 }
  0x99   :  { %vm57_vm6 = vcmp.eq.s32.totalorder %v45_v39, %v54_v44  ;;  %vm58_vm7 = vcmp.eq.s32.totalorder %v46_v40, %v54_v44 }
  0x9a   :  { %vm72_vm10 = vmor %vm58_vm7, %vm68_vm5  ;;  %vm1837_vm5 = vcmask 1041409  }
  0x9b   :  { %vm71_vm11 = vmor %vm57_vm6, %vm67_vm4  ;;  %v1950_v46 = vsel %vm72_vm10, 1.0, %v2367_v10  ;;  %vm940_vm4 = vcmask 523264   ;;  %vm1940_vm6 = vcmask 25600  }
  0x9c   :  { %v82_v47 = vpack.c.bf16 %v1950_v46, %v1948_v45  ;;  %vm1953_vm14 = vmpackc.low %vm71_vm11, %vm69_vm13  ;;  %v2372_v46 = vmov 1966171168  }
  0x9e   :  { %1952 = vmatprep.mubr.msk.bf16.mxu0 %vm120_vm12, %v82_v47  ;;  %v213_v47 = vunpack.c.l.s4 %v2372_v46 }
  0x9f   :  { %1954 = vmatmul.mubr.msk.bf16.vlgmr.msra.gmra.mrb[0].mxu0 %vm1953_vm14, %v2368_v48  ;;  %v208_v48 = vld [vmem:[%s2911_s1] sm:$0x3]  ;;  %s2373_s1 = smov 80  }
  0xa0   :  { %2112 = vmatprep.mubr.msk.bf16.mxu0 %vm2371_vm0, %v2367_v10 }
 0x172   :  { %v162_v50 = vpop.f32.mrb[0].mxu0 }
 0x173   :  { %v163_v51 = vadd.f32 %v1951_v49, %v162_v50  ;;  %v164_v52 = vpop.f32.mrb[1].mxu0  ;;  %v214_v50 = vunpack.c.0.s8 %v213_v47 }
 0x174   :  { %v165_v53 = vpop.f32.mrb[2].mxu0 }
 0x175   :  { %v166_v54 = vadd.f32 %v1951_v49, %v165_v53  ;;  %v167_v55 = vpop.f32.mrb[3].mxu0  ;;  %v170_v56 = vsel %vm169_vm15, %v163_v51, 0.0 }
 0x176   :  { %171 = vadd.xlane.f32.xlu0 %v170_v56 }
 0x177   :  { %v173_v57 = vsel %vm169_vm15, %v166_v54, 0.0 }
 0x178   :  { %174 = vadd.xlane.f32.xlu1 %v173_v57 }
 0x189   :  { %198 = vrot.lane.b32.xlu1 %v1951_v49, %s2369_s2 }
 0x203   :  { %v172_v58 = vpop.xlane.xlu0 %171 }
 0x204   :  { %v177_v59 = vmul.f32 0.03125, %v172_v58 }
 0x205   :  { %v175_v60 = vpop.xlane.xlu1 %174 }
 0x206   :  { %v179_v61 = vsub.f32 %v163_v51, %v177_v59  ;;  %v178_v62 = vmul.f32 0.03125, %v175_v60  ;;  %v216_v51 = vshrl.u32 %v44_v38, 7 }
 0x208   :  { %v180_v63 = vsub.f32 %v166_v54, %v178_v62  ;;  %v181_v0 = vmul.f32 %v179_v61, %v179_v61  ;;  %v217_v53 = vsub.s32 %v214_v50, %v216_v51  ;;  %v298_v56 = vsub.s32 0, %v216_v51 }
 0x209   :  { %v199_v19 = vpop.permute.xlu1 %198 }
 0x20a   :  { %v183_v1 = vsel %vm169_vm15, %v181_v0, 0.0  ;;  %v182_v2 = vmul.f32 %v180_v63, %v180_v63 }
 0x20b   :  { %184 = vadd.xlane.f32.xlu0 %v183_v1 }
 0x20c   :  { %v186_v3 = vsel %vm169_vm15, %v182_v2, 0.0 }
 0x20f   :  { %187 = vadd.xlane.f32.xlu0 %v186_v3 }
 0x225   :  { %203 = vrot.lane.b32.xlu0 %v1951_v49, %s2370_s17  ;;  %v209_v49 = vsub.f32 1.0, %v208_v48 }
 0x227   :  { %v210_v52 = vmul.f32 -1e+09, %v209_v49 }
 0x229   :  { %v218_v54 = vrot.slane %v210_v52, %v217_v53 }
 0x22b   :  { %v226_v55 = vrot.slane %v218_v54, %v217_v53  ;;  %v219_v58 = vcombine.high %v218_v54, %v218_v54 }
 0x22d   :  { %v2578_v57 = vrot.slane %v226_v55, %v298_v56  ;;  %v233_v62 = vrot.slane %v219_v58, %v217_v53 }
 0x22f   :  { %v2582_v38 = vrot.slane %v233_v62, %v298_v56 }
 0x298   :  { %v185_v11 = vpop.xlane.xlu0 %184 }
 0x299   :  { %v189_v12 = vmul.f32 0.03125, %v185_v11 }
 0x29b   :  { %v191_v13 = vadd.f32 1e-05, %v189_v12 }
 0x29c   :  { %v188_v14 = vpop.xlane.xlu0 %187 }
 0x29d   :  { %2276 = vrsqrt.f32 %v191_v13  ;;  %v190_v15 = vmul.f32 0.03125, %v188_v14 }
 0x29f   :  { %v192_v16 = vadd.f32 1e-05, %v190_v15 }
 0x2a0   :  { %v204_v23 = vpop.permute.xlu0 %203 }
 0x2a1   :  { %2278 = vrsqrt.f32 %v192_v16 }
 0x2a7   :  { %v2277_v17 = vpop.eup %2276 }
 0x2a8   :  { %v195_v18 = vmul.f32 %v2277_v17, %v179_v61 }
 0x2aa   :  { %v201_v22 = vmul.f32 %v199_v19, %v195_v18 }
 0x2ab   :  { %v2279_v20 = vpop.eup %2278 }
 0x2ac   :  { %v196_v21 = vmul.f32 %v2279_v20, %v180_v63  ;;  %v2544_v25 = vadd.f32 %v204_v23, %v201_v22 }
 0x2ae   :  { %v202_v24 = vmul.f32 %v199_v19, %v196_v21 }
 0x2b0   :  { %v2546_v26 = vadd.f32 %v204_v23, %v202_v24 }
 0x2b2   :  { %v240_v27 = vpack.c.bf16 %v2546_v26, %v2544_v25 }
 0x2b4   :  { %2077 = vmatmul.mubr.msk.bf16.vlgmr.msra.gmra.mrb[0].mxu1 %vm169_vm15, %v240_v27 }
 0x2b5   :  { %2082 = vmatprep.mubr.msk.bf16.mxu1 %vm2371_vm0, %v2367_v10 }
 0x387   :  { %v283_v29 = vpop.f32.mrb[0].mxu1 }
 0x388   :  { %v284_v30 = vadd.f32 %v1955_v28, %v283_v29  ;;  %v2078_v31 = vpop.f32.mrb[1].mxu1 }
 0x389   :  { %v286_v32 = vpop.f32.mrb[2].mxu1 }
 0x38a   :  { %v2553_v33 = vpack.c.bf16 %v284_v30, %v284_v30  ;;  %v287_v34 = vadd.f32 %v1955_v28, %v286_v32  ;;  %v2079_v35 = vpop.f32.mrb[3].mxu1  ;;  %v290_v40 = vmul.f32 0.25, %v284_v30 }
 0x38c   :  { %307 = vrot.lane.b32.xlu1 %v2553_v33, %s2369_s2  ;;  %v2557_v36 = vpack.c.bf16 %v287_v34, %v287_v34  ;;  %v2563_v42 = vpack.c.bf16 %v290_v40, %v290_v40  ;;  %v291_v44 = vmul.f32 0.25, %v287_v34 }
 0x38e   :  { %v293_v45 = vpack.c.bf16 %v291_v44, %v291_v44 }
 0x390   :  { %357 = vrot.lane.b32.xlu1 %v2557_v36, %s2369_s2 }
 0x3fe   :  { %v308_v37 = vpop.permute.xlu1 %307 }
 0x3ff   :  { %v314_v39 = vsel %vm309_vm1, %v308_v37, 0 }
 0x400   :  { %2081 = vmatpush3.bf16.xpose.msra.mxu1 %v314_v39 }
 0x401   :  { %2086 = vmatprep.subr.bf16.mxu1 %v2367_v10 }
 0x402   :  { %v358_v41 = vpop.permute.xlu1 %357 }
 0x403   :  { %v363_v43 = vsel %vm309_vm1, %v358_v41, 0 }
 0x407   :  { %2083 = vmatmul.mubr.msk.bf16.vlgmr.msra.gmra.mrb[4].mxu1 %vm309_vm1, %v2563_v42 }
 0x408   :  { %2087 = vmatpush3.bf16.xpose.msra.mxu1 %v363_v43  ;;  %2088 = vmatprep.mubr.msk.bf16.mxu1 %vm2371_vm0, %v2367_v10 }
 0x409   :  { %2092 = vmatprep.subr.bf16.mxu1 %v2367_v10 }
 0x40f   :  { %2089 = vmatmul.mubr.msk.bf16.vlgmr.msra.gmra.mrb[8].mxu1 %vm309_vm1, %v293_v45 }
 0x410   :  { %2094 = vmatprep.mubr.msk.bf16.mxu1 %vm2371_vm0, %v2367_v10 }
 0x4da   :  { %v350_v59 = vpop.f32.mrb[4].mxu1 }
 0x4db   :  { %v351_v60 = vadd.f32 %v350_v59, %v2578_v57  ;;  %v2084_v61 = vpop.f32.mrb[5].mxu1 }
 0x4dc   :  { %v353_v63 = vpop.f32.mrb[6].mxu1 }
 0x4dd   :  { %v2085_v0 = vpop.f32.mrb[7].mxu1  ;;  %v406_v1 = vsel %vm405_vm2, %v351_v60, -inf }
 0x4de   :  { %407 = vmax.xlane.f32.xlu0 %v406_v1 }
 0x4e2   :  { %v399_v2 = vpop.f32.mrb[8].mxu1 }
 0x4e3   :  { %v400_v3 = vadd.f32 %v399_v2, %v2582_v38  ;;  %v2090_v4 = vpop.f32.mrb[9].mxu1 }
 0x4e4   :  { %v402_v5 = vpop.f32.mrb[10].mxu1 }
 0x4e5   :  { %v2091_v6 = vpop.f32.mrb[11].mxu1  ;;  %v409_v7 = vsel %vm405_vm2, %v400_v3, -inf }
 0x4e6   :  { %410 = vmax.xlane.f32.xlu1 %v409_v7 }
 0x4f7   :  { %430 = vrot.lane.b32.xlu1 %v2553_v33, %s2370_s17 }
 0x4fb   :  { %530 = vrot.lane.b32.xlu1 %v2553_v33, %s2373_s1 }
 0x4ff   :  { %581 = vrot.lane.b32.xlu1 %v2557_v36, %s2373_s1 }
 0x503   :  { %579 = vrot.lane.b32.xlu1 %v293_v45, %s2374_s27 }
 0x56b   :  { %v408_v8 = vpop.xlane.xlu0 %407 }
 0x56c   :  { %v412_v9 = vsub.f32 %v351_v60, %v408_v8 }
 0x56e   :  { %v414_v11 = vmul.f32 1.442695, %v412_v9 }
 0x570   :  { %2280 = vpow2.f32 %v414_v11 }
 0x573   :  { %v411_v12 = vpop.xlane.xlu1 %410 }
 0x574   :  { %v413_v13 = vsub.f32 %v400_v3, %v411_v12 }
 0x576   :  { %v416_v14 = vmul.f32 1.442695, %v413_v13 }
 0x577   :  { %v431_v15 = vpop.permute.xlu1 %430 }
 0x578   :  { %2282 = vpow2.f32 %v416_v14  ;;  %v437_v16 = vsel %vm435_vm3, %v431_v15, 0 }
 0x579   :  { %2093 = vmatpush3.bf16.msra.mxu1 %v437_v16 }
 0x57a   :  { %v2281_v17 = vpop.eup %2280  ;;  %2098 = vmatprep.subr.bf16.mxu1 %v2367_v10 }
 0x57b   :  { %v531_v18 = vpop.permute.xlu1 %530  ;;  %v418_v19 = vsel %vm405_vm2, %v2281_v17, 0.0 }
 0x57c   :  { %419 = vadd.xlane.f32.xlu0 %v418_v19  ;;  %v536_v40 = vsel %vm309_vm1, %v531_v18, 0 }
 0x57f   :  { %v582_v20 = vpop.permute.xlu1 %581 }
 0x580   :  { %v587_v21 = vsel %vm309_vm1, %v582_v20, 0  ;;  %v760_v20 = vld [vmem:[%s2914_s4] sm:$0xff] }
 0x581   :  { %2111 = vmatpush3.bf16.xpose.msra.mxu0 %v587_v21  ;;  %v761_v21 = vld [vmem:[%s2914_s4 + $0x8] sm:$0xff] }
 0x582   :  { %v2283_v22 = vpop.eup %2282  ;;  %2122 = vmatprep.subr.bf16.mxu0 %v2367_v10 }
 0x583   :  { %v421_v23 = vsel %vm405_vm2, %v2283_v22, 0.0  ;;  %v580_v24 = vpop.permute.xlu1 %579 }
 0x584   :  { %422 = vadd.xlane.f32.xlu0 %v421_v23  ;;  %v762_v23 = vld [vmem:[%s2914_s4 + $0x10] sm:$0xff] }
 0x588   :  { %2113 = vmatmul.mubr.msk.bf16.vlgmr.msra.gmra.mrb[4].mxu0 %vm309_vm1, %v580_v24  ;;  %v763_v24 = vld [vmem:[%s2914_s4 + $0x18] sm:$0xff] }
 0x589   :  { %2124 = vmatprep.mubr.msk.bf16.mxu0 %vm2371_vm0, %v2367_v10 }
 0x59a   :  { %479 = vrot.lane.b32.xlu0 %v2557_v36, %s2370_s17 }
 0x59e   :  { %528 = vrot.lane.b32.xlu0 %v2563_v42, %s2374_s27 }
 0x609   :  { %v420_v27 = vpop.xlane.xlu0 %419 }
 0x60a   :  { %2284 = vrcp.f32 %v420_v27  ;;  %v765_v27 = vpack.c.bf16 %v763_v24, %v762_v23 }
 0x611   :  { %v423_v28 = vpop.xlane.xlu0 %422 }
 0x612   :  { %2286 = vrcp.f32 %v423_v28 }
 0x614   :  { %v2285_v29 = vpop.eup %2284 }
 0x615   :  { %v425_v30 = vmul.f32 %v2285_v29, %v2281_v17  ;;  %v480_v31 = vpop.permute.xlu0 %479 }
 0x616   :  { %v485_v34 = vsel %vm435_vm3, %v480_v31, 0 }
 0x617   :  { %v428_v32 = vpack.c.bf16 %v425_v30, %v425_v30 }
 0x619   :  { %2095 = vmatmul.mubr.msk.bf16.vlgmr.msra.gmra.mrb[12].mxu1 %vm405_vm2, %v428_v32  ;;  %v529_v41 = vpop.permute.xlu0 %528 }
 0x61a   :  { %2099 = vmatpush3.bf16.msra.mxu1 %v485_v34  ;;  %2100 = vmatprep.mubr.msk.bf16.mxu1 %vm2371_vm0, %v2367_v10 }
 0x61b   :  { %2104 = vmatprep.subr.bf16.mxu1 %v2367_v10 }
 0x61c   :  { %v2287_v35 = vpop.eup %2286 }
 0x61d   :  { %v427_v37 = vmul.f32 %v2287_v35, %v2283_v22  ;;  %v764_v22 = vpack.c.bf16 %v761_v21, %v760_v20 }
 0x61f   :  { %v429_v39 = vpack.c.bf16 %v427_v37, %v427_v37 }
 0x621   :  { %2101 = vmatmul.mubr.msk.bf16.vlgmr.msra.gmra.mrb[16].mxu1 %vm405_vm2, %v429_v39 }
 0x622   :  { %2106 = vmatprep.mubr.msk.bf16.mxu1 %vm2371_vm0, %v2367_v10 }
 0x623   :  { %2105 = vmatpush3.bf16.xpose.msra.mxu1 %v536_v40 }
 0x624   :  { %2116 = vmatprep.subr.bf16.mxu1 %v2367_v10 }
 0x62a   :  { %2107 = vmatmul.mubr.msk.bf16.vlgmr.msra.gmra.mrb[20].mxu1 %vm309_vm1, %v529_v41 }
 0x62b   :  { %2118 = vmatprep.mubr.msk.bf16.mxu1 %vm2371_vm0, %v2367_v10 }
 0x65b   :  { %v623_v42 = vpop.f32.mrb[4].mxu0 }
 0x65c   :  { %v624_v43 = vadd.f32 %v623_v42, %v2582_v38  ;;  %v2114_v44 = vpop.f32.mrb[5].mxu0 }
 0x65d   :  { %v626_v45 = vpop.f32.mrb[6].mxu0 }
 0x65e   :  { %v2115_v46 = vpop.f32.mrb[7].mxu0  ;;  %v632_v47 = vsel %vm405_vm2, %v624_v43, -inf }
 0x65f   :  { %633 = vmax.xlane.f32.xlu1 %v632_v47  ;;  %v1965_v46 = vld [vmem:[#allocation2 + $0x1] ss:$0 sm:$0xff] }
 0x670   :  { %653 = vrot.lane.b32.xlu1 %v2553_v33, %s2375_s28 }
 0x6ec   :  { %v634_v48 = vpop.xlane.xlu1 %633  ;;  %v2623_v49 = vpop.f32.mrb[12].mxu1 }
 0x6ed   :  { %v2096_v50 = vpop.f32.mrb[13].mxu1  ;;  %v636_v52 = vsub.f32 %v624_v43, %v634_v48 }
 0x6ee   :  { %v476_v51 = vpop.f32.mrb[14].mxu1 }
 0x6ef   :  { %v2097_v53 = vpop.f32.mrb[15].mxu1  ;;  %v639_v56 = vmul.f32 1.442695, %v636_v52 }
 0x6f0   :  { %v654_v54 = vpop.permute.xlu1 %653 }
 0x6f1   :  { %v659_v55 = vsel %vm435_vm3, %v654_v54, 0  ;;  %2288 = vpow2.f32 %v639_v56 }
 0x6f2   :  { %2117 = vmatpush3.bf16.msra.mxu1 %v659_v55 }
 0x6f3   :  { %2128 = vmatprep.subr.bf16.mxu1 %v2367_v10 }
 0x6f4   :  { %v2627_v58 = vpop.f32.mrb[16].mxu1 }
 0x6f5   :  { %v2102_v59 = vpop.f32.mrb[17].mxu1 }
 0x6f6   :  { %v524_v60 = vpop.f32.mrb[18].mxu1 }
 0x6f7   :  { %v2103_v33 = vpop.f32.mrb[19].mxu1 }
 0x6fb   :  { %v2289_v3 = vpop.eup %2288 }
 0x6fc   :  { %v644_v4 = vsel %vm405_vm2, %v2289_v3, 0.0 }
 0x6fd   :  { %v572_v61 = vpop.f32.mrb[20].mxu1 }
 0x6fe   :  { %v573_v62 = vadd.f32 %v572_v61, %v2578_v57  ;;  %v2108_v63 = vpop.f32.mrb[21].mxu1 }
 0x6ff   :  { %v575_v0 = vpop.f32.mrb[22].mxu1 }
 0x700   :  { %v2109_v1 = vpop.f32.mrb[23].mxu1  ;;  %v629_v2 = vsel %vm405_vm2, %v573_v62, -inf }
 0x701   :  { %630 = vmax.xlane.f32.xlu0 %v629_v2  ;;  %v855_v2 = vld [vmem:[%s2915_s5 + $0x8] sm:$0xff] }
 0x705   :  { %645 = vadd.xlane.f32.xlu0 %v644_v4  ;;  %v856_v4 = vld [vmem:[%s2915_s5 + $0x10] sm:$0xff] }
 0x78e   :  { %v631_v5 = vpop.xlane.xlu0 %630 }
 0x78f   :  { %v635_v6 = vsub.f32 %v573_v62, %v631_v5  ;;  %v857_v5 = vld [vmem:[%s2915_s5 + $0x18] sm:$0xff] }
 0x791   :  { %v637_v7 = vmul.f32 1.442695, %v635_v6  ;;  %v859_v6 = vpack.c.bf16 %v857_v5, %v856_v4 }
 0x792   :  { %v646_v11 = vpop.xlane.xlu0 %645 }
 0x793   :  { %2290 = vpow2.f32 %v637_v7  ;;  %v1971_v7 = vld [vmem:[#allocation2 + $0x2] ss:$0 sm:$0xff] }
 0x794   :  { %2292 = vrcp.f32 %v646_v11 }
 0x79d   :  { %v2291_v8 = vpop.eup %2290 }
 0x79e   :  { %v641_v9 = vsel %vm405_vm2, %v2291_v8, 0.0  ;;  %v2293_v12 = vpop.eup %2292 }
 0x79f   :  { %642 = vadd.xlane.f32.xlu0 %v641_v9  ;;  %v650_v14 = vmul.f32 %v2293_v12, %v2289_v3 }
 0x7a1   :  { %v652_v17 = vpack.c.bf16 %v650_v14, %v650_v14 }
 0x7b5   :  { %701 = vrot.lane.b32.xlu0 %v2557_v36, %s2375_s28 }
 0x82c   :  { %v643_v13 = vpop.xlane.xlu0 %642 }
 0x82d   :  { %2294 = vrcp.f32 %v643_v13 }
 0x830   :  { %v702_v15 = vpop.permute.xlu0 %701 }
 0x831   :  { %v707_v16 = vsel %vm435_vm3, %v702_v15, 0 }
 0x832   :  { %2123 = vmatpush3.bf16.msra.mxu0 %v707_v16 }
 0x833   :  { %2136 = vmatprep.subr.bf16.mxu0 %v2367_v10 }
 0x835   :  { %2125 = vmatmul.mubr.msk.bf16.vlgmr.msra.gmra.mrb[8].mxu0 %vm405_vm2, %v652_v17 }
 0x836   :  { %2140 = vmatprep.mubr.msk.bf16.mxu0 %vm2371_vm0, %v2367_v10 }
 0x837   :  { %v2295_v18 = vpop.eup %2294 }
 0x838   :  { %v648_v36 = vmul.f32 %v2295_v18, %v2291_v8 }
 0x83a   :  { %v651_v19 = vpack.c.bf16 %v648_v36, %v648_v36 }
 0x83c   :  { %2119 = vmatmul.mubr.msk.bf16.vlgmr.msra.gmra.mrb[24].mxu1 %vm405_vm2, %v651_v19 }
 0x83d   :  { %2132 = vmatprep.mubr.msk.bf16.mxu1 %vm2371_vm0, %v2367_v10  ;;  %2129 = vmatpush3.bf16.msra.mxu1 %v764_v22 }
 0x83e   :  { %2130 = vmatprep.subr.bf16.mxu1 %v2367_v10 }
 0x841   :  { %2131 = vmatpush3.bf16.msra.mxu1 %v765_v27  ;;  %v1967_v27 = vld [vmem:[%s2915_s5 + $0x20] sm:$0xff] }
 0x842   :  { %2144 = vmatprep.subr.bf16.mxu1 %v2367_v10 }
 0x908   :  { %v743_v28 = vpop.f32.mrb[8].mxu0 }
 0x909   :  { %v2126_v29 = vpop.f32.mrb[9].mxu0 }
 0x90a   :  { %v746_v30 = vpop.f32.mrb[10].mxu0 }
 0x90b   :  { %v2127_v31 = vpop.f32.mrb[11].mxu0  ;;  %v1969_v30 = vld [vmem:[%s2915_s5 + $0x30] sm:$0xff] }
 0x90c   :  { %v1970_v31 = vld [vmem:[%s2915_s5 + $0x38] sm:$0xff] }
 0x90f   :  { %v695_v32 = vpop.f32.mrb[24].mxu1 }
 0x910   :  { %v2265_v34 = vpack.i.bf16 %v743_v28, %v695_v32  ;;  %v2120_v35 = vpop.f32.mrb[25].mxu1  ;;  %v1968_v28 = vld [vmem:[%s2915_s5 + $0x28] sm:$0xff] }
 0x911   :  { %v698_v37 = vpop.f32.mrb[26].mxu1  ;;  %v865_v29 = vpack.c.bf16 %v1968_v28, %v1967_v27 }
 0x912   :  { %2266 = vrot.lane.b32.xlu1 %v2265_v34, %s2376_s14  ;;  %v2121_v39 = vpop.f32.mrb[27].mxu1  ;;  %v866_v34 = vpack.c.bf16 %v1970_v31, %v1969_v30 }
 0x913   :  { %v945_v32 = vsel %vm940_vm4, %v865_v29, 0 }
 0x914   :  { %v948_v35 = vsel %vm940_vm4, %v866_v34, 0 }
 0x984   :  { %v2267_v40 = vpop.permute.xlu1 %2266 }
 0x985   :  { %v2269_v41 = vunpack.i.h.bf16 %v2267_v40  ;;  %v2268_v42 = vunpack.i.l.bf16 %v2267_v40 }
 0x987   :  { %v758_v43 = vsel %vm309_vm1, %v2627_v58, %v2269_v41  ;;  %v757_v44 = vsel %vm309_vm1, %v2623_v49, %v2268_v42 }
 0x988   :  { %v759_v45 = vpack.c.bf16 %v758_v43, %v757_v44 }
 0x98a   :  { %2133 = vmatmul.mubr.msk.bf16.vlgmr.msra.gmra.mrb[28].mxu1 %vm169_vm15, %v759_v45 }
 0x98b   :  { %2148 = vmatprep.mubr.msk.bf16.mxu1 %vm2371_vm0, %v2367_v10  ;;  %2145 = vmatpush3.bf16.xpose.msra.mxu1 %v945_v32 }
 0x98c   :  { %2146 = vmatprep.subr.bf16.mxu1 %v2367_v10 }
 0x993   :  { %2147 = vmatpush3.bf16.xpose.msra.mxu1 %v948_v35 }
 0x994   :  { %2166 = vmatprep.subr.bf16.mxu1 %v2367_v10 }
 0xa5d   :  { %v808_v47 = vpop.f32.mrb[28].mxu1 }
 0xa5e   :  { %v809_v48 = vadd.f32 %v1965_v46, %v808_v47  ;;  %v2134_v50 = vpop.f32.mrb[29].mxu1 }
 0xa5f   :  { %v811_v51 = vpop.f32.mrb[30].mxu1 }
 0xa60   :  { %v812_v52 = vadd.f32 %v1965_v46, %v811_v51  ;;  %v2135_v53 = vpop.f32.mrb[31].mxu1  ;;  %v815_v54 = vadd.f32 %v809_v48, %v2544_v25 }
 0xa62   :  { %v817_v55 = vsel %vm169_vm15, %v815_v54, 0.0  ;;  %v816_v56 = vadd.f32 %v812_v52, %v2546_v26  ;;  %v854_v26 = vld [vmem:[%s2915_s5] sm:$0xff] }
 0xa63   :  { %818 = vadd.xlane.f32.xlu1 %v817_v55  ;;  %v858_v3 = vpack.c.bf16 %v855_v2, %v854_v26 }
 0xa64   :  { %v820_v49 = vsel %vm169_vm15, %v816_v56, 0.0 }
 0xa65   :  { %821 = vadd.xlane.f32.xlu0 %v820_v49  ;;  %2137 = vmatpush3.bf16.msra.mxu0 %v858_v3 }
 0xa66   :  { %2138 = vmatprep.subr.bf16.mxu0 %v2367_v10 }
 0xa69   :  { %2139 = vmatpush3.bf16.msra.mxu0 %v859_v6 }
 0xa6a   :  { %2152 = vmatprep.subr.bf16.mxu0 %v2367_v10 }
 0xaf0   :  { %v819_v58 = vpop.xlane.xlu1 %818 }
 0xaf1   :  { %v823_v59 = vmul.f32 0.03125, %v819_v58 }
 0xaf2   :  { %v822_v60 = vpop.xlane.xlu0 %821 }
 0xaf3   :  { %v825_v33 = vsub.f32 %v815_v54, %v823_v59  ;;  %v824_v61 = vmul.f32 0.03125, %v822_v60 }
 0xaf5   :  { %v826_v62 = vsub.f32 %v816_v56, %v824_v61  ;;  %v827_v63 = vmul.f32 %v825_v33, %v825_v33 }
 0xaf7   :  { %v829_v0 = vsel %vm169_vm15, %v827_v63, 0.0  ;;  %v828_v1 = vmul.f32 %v826_v62, %v826_v62 }
 0xaf8   :  { %830 = vadd.xlane.f32.xlu0 %v829_v0 }
 0xaf9   :  { %v832_v25 = vsel %vm169_vm15, %v828_v1, 0.0 }
 0xafa   :  { %833 = vadd.xlane.f32.xlu1 %v832_v25 }
 0xb0b   :  { %849 = vrot.lane.b32.xlu1 %v1965_v46, %s2370_s17 }
 0xb0e   :  { %844 = vrot.lane.b32.xlu0 %v1965_v46, %s2369_s2 }
 0xb0f   :  { %937 = vrot.lane.b32.xlu1 %v1971_v7, %s2370_s17 }
 0xb85   :  { %v831_v8 = vpop.xlane.xlu0 %830 }
 0xb86   :  { %v835_v9 = vmul.f32 0.03125, %v831_v8  ;;  %v1974_v8 = vld [vmem:[#allocation2 + $0x3] ss:$0 sm:$0xff] }
 0xb87   :  { %v834_v11 = vpop.xlane.xlu1 %833 }
 0xb88   :  { %v837_v12 = vadd.f32 1e-05, %v835_v9  ;;  %v836_v13 = vmul.f32 0.03125, %v834_v11 }
 0xb89   :  { %v845_v16 = vpop.permute.xlu0 %844 }
 0xb8a   :  { %2296 = vrsqrt.f32 %v837_v12  ;;  %v838_v14 = vadd.f32 1e-05, %v836_v13 }
 0xb8b   :  { %v850_v20 = vpop.permute.xlu1 %849 }
 0xb8c   :  { %2298 = vrsqrt.f32 %v838_v14 }
 0xb8f   :  { %v938_v63 = vpop.permute.xlu1 %937 }
 0xb94   :  { %v2297_v15 = vpop.eup %2296 }
 0xb95   :  { %v841_v17 = vmul.f32 %v2297_v15, %v825_v33 }
 0xb96   :  { %v2299_v18 = vpop.eup %2298 }
 0xb97   :  { %v842_v36 = vmul.f32 %v2299_v18, %v826_v62  ;;  %v847_v19 = vmul.f32 %v845_v16, %v841_v17 }
 0xb99   :  { %v848_v21 = vmul.f32 %v845_v16, %v842_v36  ;;  %v852_v22 = vadd.f32 %v850_v20, %v847_v19  ;;  %v1975_v19 = vld [vmem:[%s2913_s3 + $0x20] sm:$0xff] }
 0xb9b   :  { %v853_v23 = vadd.f32 %v850_v20, %v848_v21  ;;  %v1976_v20 = vld [vmem:[%s2913_s3 + $0x28] sm:$0xff] }
 0xb9c   :  { %v1037_v21 = vpack.c.bf16 %v1976_v20, %v1975_v19 }
 0xb9d   :  { %v867_v24 = vpack.c.bf16 %v853_v23, %v852_v22 }
 0xb9f   :  { %2141 = vmatmul.mubr.msk.bf16.vlgmr.msra.gmra.mrb[12].mxu0 %vm169_vm15, %v867_v24 }
 0xba0   :  { %2156 = vmatprep.mubr.msk.bf16.mxu0 %vm2371_vm0, %v2367_v10  ;;  %2153 = vmatpush3.bf16.msra.mxu0 %v1037_v21 }
 0xba1   :  { %2154 = vmatprep.subr.bf16.mxu0 %v2367_v10 }
 0xc72   :  { %v910_v37 = vpop.f32.mrb[12].mxu0 }
 0xc73   :  { %v911_v39 = vadd.f32 %v1971_v7, %v910_v37  ;;  %v2142_v40 = vpop.f32.mrb[13].mxu0 }
 0xc74   :  { %v913_v41 = vpop.f32.mrb[14].mxu0 }
 0xc75   :  { %v919_v42 = vmul.f32 0.044715, %v911_v39  ;;  %v914_v43 = vadd.f32 %v1971_v7, %v913_v41  ;;  %v2143_v44 = vpop.f32.mrb[15].mxu0  ;;  %v917_v58 = vmul.f32 0.5, %v911_v39 }
 0xc77   :  { %v921_v45 = vmul.f32 %v919_v42, %v911_v39  ;;  %v920_v46 = vmul.f32 0.044715, %v914_v43  ;;  %v918_v59 = vmul.f32 0.5, %v914_v43 }
 0xc79   :  { %v923_v47 = vmul.f32 %v921_v45, %v911_v39  ;;  %v922_v48 = vmul.f32 %v920_v46, %v914_v43  ;;  %v1979_v46 = vld [vmem:[#allocation2 + $0x4] ss:$0 sm:$0xff] }
 0xc7b   :  { %v925_v50 = vadd.f32 %v923_v47, %v911_v39  ;;  %v924_v51 = vmul.f32 %v922_v48, %v914_v43 }
 0xc7d   :  { %v927_v52 = vmul.f32 0.7978846, %v925_v50  ;;  %v926_v53 = vadd.f32 %v924_v51, %v914_v43 }
 0xc7f   :  { %2300 = vtanh.f32 %v927_v52  ;;  %v928_v54 = vmul.f32 0.7978846, %v926_v53 }
 0xc81   :  { %2302 = vtanh.f32 %v928_v54 }
 0xc89   :  { %v2301_v55 = vpop.eup %2300 }
 0xc8a   :  { %v931_v56 = vadd.f32 1.0, %v2301_v55 }
 0xc8b   :  { %v2303_v49 = vpop.eup %2302 }
 0xc8c   :  { %v932_v60 = vadd.f32 1.0, %v2303_v49  ;;  %v933_v33 = vmul.f32 %v931_v56, %v917_v58 }
 0xc8e   :  { %v934_v61 = vmul.f32 %v932_v60, %v918_v59 }
 0xc90   :  { %v935_v62 = vpack.c.bf16 %v934_v61, %v933_v33 }
 0xc92   :  { %2149 = vmatmul.mubr.msk.bf16.vlgmr.msra.gmra.mrb[32].mxu1 %vm940_vm4, %v935_v62 }
 0xc93   :  { %2168 = vmatprep.mubr.msk.bf16.mxu1 %vm2371_vm0, %v2367_v10 }
 0xd65   :  { %v984_v0 = vpop.f32.mrb[32].mxu1 }
 0xd66   :  { %v985_v1 = vadd.f32 %v984_v0, %v938_v63  ;;  %v2150_v25 = vpop.f32.mrb[33].mxu1 }
 0xd67   :  { %v987_v26 = vpop.f32.mrb[34].mxu1 }
 0xd68   :  { %v988_v2 = vadd.f32 %v987_v26, %v938_v63  ;;  %v2151_v3 = vpop.f32.mrb[35].mxu1  ;;  %v991_v4 = vadd.f32 %v985_v1, %v852_v22  ;;  %v1977_v22 = vld [vmem:[%s2913_s3 + $0x30] sm:$0xff] }
 0xd6a   :  { %v994_v5 = vsel %vm169_vm15, %v991_v4, 0.0  ;;  %v992_v6 = vadd.f32 %v988_v2, %v853_v23  ;;  %v1978_v23 = vld [vmem:[%s2913_s3 + $0x38] sm:$0xff] }
 0xd6b   :  { %995 = vadd.xlane.f32.xlu0 %v994_v5  ;;  %v1038_v24 = vpack.c.bf16 %v1978_v23, %v1977_v22 }
 0xd6c   :  { %v997_v7 = vsel %vm169_vm15, %v992_v6, 0.0 }
 0xd6d   :  { %998 = vadd.xlane.f32.xlu1 %v997_v7  ;;  %2155 = vmatpush3.bf16.msra.mxu0 %v1038_v24 }
 0xd6e   :  { %2160 = vmatprep.subr.bf16.mxu0 %v2367_v10 }
 0xd7e   :  { %1027 = vrot.lane.b32.xlu1 %v1974_v8, %s2369_s2 }
 0xdf8   :  { %v996_v9 = vpop.xlane.xlu0 %995 }
 0xdf9   :  { %v1000_v11 = vmul.f32 0.03125, %v996_v9 }
 0xdfa   :  { %v999_v12 = vpop.xlane.xlu1 %998 }
 0xdfb   :  { %v1002_v13 = vsub.f32 %v991_v4, %v1000_v11  ;;  %v1001_v14 = vmul.f32 0.03125, %v999_v12 }
 0xdfd   :  { %v1003_v15 = vsub.f32 %v992_v6, %v1001_v14  ;;  %v1004_v16 = vmul.f32 %v1002_v13, %v1002_v13 }
 0xdfe   :  { %v1028_v41 = vpop.permute.xlu1 %1027 }
 0xdff   :  { %v1006_v17 = vsel %vm169_vm15, %v1004_v16, 0.0  ;;  %v1005_v18 = vmul.f32 %v1003_v15, %v1003_v15 }
 0xe00   :  { %1007 = vadd.xlane.f32.xlu0 %v1006_v17 }
 0xe01   :  { %v1009_v36 = vsel %vm169_vm15, %v1005_v18, 0.0 }
 0xe04   :  { %1010 = vadd.xlane.f32.xlu0 %v1009_v36 }
 0xe8d   :  { %v1008_v27 = vpop.xlane.xlu0 %1007 }
 0xe8e   :  { %v1012_v28 = vmul.f32 0.03125, %v1008_v27 }
 0xe90   :  { %v1014_v29 = vadd.f32 1e-05, %v1012_v28 }
 0xe91   :  { %v1011_v30 = vpop.xlane.xlu0 %1010 }
 0xe92   :  { %2304 = vrsqrt.f32 %v1014_v29  ;;  %v1013_v31 = vmul.f32 0.03125, %v1011_v30 }
 0xe94   :  { %v1015_v32 = vadd.f32 1e-05, %v1013_v31 }
 0xe96   :  { %2306 = vrsqrt.f32 %v1015_v32 }
 0xe9c   :  { %v2305_v34 = vpop.eup %2304 }
 0xe9d   :  { %v1018_v35 = vmul.f32 %v2305_v34, %v1002_v13 }
 0xe9f   :  { %v1024_v40 = vmul.f32 %v1974_v8, %v1018_v35 }
 0xea0   :  { %v2307_v37 = vpop.eup %2306 }
 0xea1   :  { %v1019_v39 = vmul.f32 %v2307_v37, %v1003_v15  ;;  %v2729_v43 = vadd.f32 %v1028_v41, %v1024_v40 }
 0xea3   :  { %v1025_v42 = vmul.f32 %v1974_v8, %v1019_v39 }
 0xea5   :  { %v2731_v44 = vadd.f32 %v1028_v41, %v1025_v42 }
 0xea7   :  { %v1039_v45 = vpack.c.bf16 %v2731_v44, %v2729_v43 }
 0xea9   :  { %2157 = vmatmul.mubr.msk.bf16.vlgmr.msra.gmra.mrb[16].mxu0 %vm169_vm15, %v1039_v45 }
 0xeaa   :  { %2162 = vmatprep.mubr.msk.bf16.mxu0 %vm2371_vm0, %v2367_v10 }
 0xf7c   :  { %v1082_v47 = vpop.f32.mrb[16].mxu0 }
 0xf7d   :  { %v1083_v48 = vadd.f32 %v1979_v46, %v1082_v47  ;;  %v2158_v50 = vpop.f32.mrb[17].mxu0 }
 0xf7e   :  { %v1085_v51 = vpop.f32.mrb[18].mxu0 }
 0xf7f   :  { %v2738_v52 = vpack.c.bf16 %v1083_v48, %v1083_v48  ;;  %v1086_v53 = vadd.f32 %v1979_v46, %v1085_v51  ;;  %v2159_v54 = vpop.f32.mrb[19].mxu0  ;;  %v1089_v59 = vmul.f32 0.25, %v1083_v48 }
 0xf81   :  { %v2740_v55 = vpack.c.bf16 %v1086_v53, %v1086_v53  ;;  %1096 = vrot.lane.b32.xlu0 %v2738_v52, %s2369_s2  ;;  %v1090_v33 = vmul.f32 0.25, %v1086_v53  ;;  %v1091_v61 = vpack.c.bf16 %v1089_v59, %v1089_v59 }
 0xf83   :  { %1145 = vrot.lane.b32.xlu1 %v2740_v55, %s2369_s2  ;;  %v1092_v62 = vpack.c.bf16 %v1090_v33, %v1090_v33 }
 0xff3   :  { %v1097_v56 = vpop.permute.xlu0 %1096 }
 0xff4   :  { %v1102_v49 = vsel %vm309_vm1, %v1097_v56, 0 }
 0xff5   :  { %2161 = vmatpush3.bf16.xpose.msra.mxu0 %v1102_v49  ;;  %v1146_v58 = vpop.permute.xlu1 %1145 }
 0xff6   :  { %v1151_v60 = vsel %vm309_vm1, %v1146_v58, 0  ;;  %2172 = vmatprep.subr.bf16.mxu0 %v2367_v10 }
 0xff7   :  { %2167 = vmatpush3.bf16.xpose.msra.mxu1 %v1151_v60 }
 0xff8   :  { %2178 = vmatprep.subr.bf16.mxu1 %v2367_v10 }
 0xffc   :  { %2163 = vmatmul.mubr.msk.bf16.vlgmr.msra.gmra.mrb[20].mxu0 %vm309_vm1, %v1091_v61 }
 0xffd   :  { %2174 = vmatprep.mubr.msk.bf16.mxu0 %vm2371_vm0, %v2367_v10 }
 0xffe   :  { %2169 = vmatmul.mubr.msk.bf16.vlgmr.msra.gmra.mrb[36].mxu1 %vm309_vm1, %v1092_v62 }
 0xfff   :  { %2180 = vmatprep.mubr.msk.bf16.mxu1 %vm2371_vm0, %v2367_v10 }
0x10cf   :  { %v1138_v63 = vpop.f32.mrb[20].mxu0 }
0x10d0   :  { %v1139_v0 = vadd.f32 %v1138_v63, %v2578_v57  ;;  %v2164_v1 = vpop.f32.mrb[21].mxu0 }
0x10d1   :  { %v1141_v25 = vpop.f32.mrb[22].mxu0  ;;  %v1187_v26 = vpop.f32.mrb[36].mxu1 }
0x10d2   :  { %v1188_v2 = vadd.f32 %v1187_v26, %v2582_v38  ;;  %v2165_v3 = vpop.f32.mrb[23].mxu0  ;;  %v2170_v4 = vpop.f32.mrb[37].mxu1  ;;  %v1193_v5 = vsel %vm405_vm2, %v1139_v0, -inf }
0x10d3   :  { %1194 = vmax.xlane.f32.xlu1 %v1193_v5  ;;  %v1190_v6 = vpop.f32.mrb[38].mxu1 }
0x10d4   :  { %v2171_v7 = vpop.f32.mrb[39].mxu1  ;;  %v1196_v8 = vsel %vm405_vm2, %v1188_v2, -inf }
0x10d5   :  { %1197 = vmax.xlane.f32.xlu0 %v1196_v8 }
0x10e4   :  { %1265 = vrot.lane.b32.xlu1 %v2740_v55, %s2370_s17 }
0x10eb   :  { %1217 = vrot.lane.b32.xlu0 %v2738_v52, %s2370_s17 }
0x1160   :  { %v1195_v9 = vpop.xlane.xlu1 %1194 }
0x1161   :  { %v1199_v11 = vsub.f32 %v1139_v0, %v1195_v9 }
0x1162   :  { %v1198_v12 = vpop.xlane.xlu0 %1197 }
0x1163   :  { %v1201_v13 = vmul.f32 1.442695, %v1199_v11  ;;  %v1200_v14 = vsub.f32 %v1188_v2, %v1198_v12 }
0x1164   :  { %v1266_v15 = vpop.permute.xlu1 %1265 }
0x1165   :  { %2308 = vpow2.f32 %v1201_v13  ;;  %v1203_v16 = vmul.f32 1.442695, %v1200_v14  ;;  %v1271_v17 = vsel %vm435_vm3, %v1266_v15, 0 }
0x1166   :  { %2179 = vmatpush3.bf16.msra.mxu1 %v1271_v17  ;;  %v1218_v18 = vpop.permute.xlu0 %1217 }
0x1167   :  { %2310 = vpow2.f32 %v1203_v16  ;;  %v1223_v36 = vsel %vm435_vm3, %v1218_v18, 0  ;;  %2190 = vmatprep.subr.bf16.mxu1 %v2367_v10 }
0x1168   :  { %2173 = vmatpush3.bf16.msra.mxu0 %v1223_v36  ;;  %v1989_v36 = vld [vmem:[%s2914_s4 + $0x20] sm:$0xff] }
0x1169   :  { %2184 = vmatprep.subr.bf16.mxu0 %v2367_v10 }
0x116f   :  { %v2309_v19 = vpop.eup %2308 }
0x1170   :  { %v1205_v20 = vsel %vm405_vm2, %v2309_v19, 0.0 }
0x1171   :  { %v2311_v21 = vpop.eup %2310  ;;  %1206 = vadd.xlane.f32.xlu0 %v1205_v20 }
0x1172   :  { %v1208_v22 = vsel %vm405_vm2, %v2311_v21, 0.0 }
0x1173   :  { %1209 = vadd.xlane.f32.xlu1 %v1208_v22  ;;  %v1992_v22 = vld [vmem:[%s2914_s4 + $0x38] sm:$0xff] }
0x1184   :  { %1316 = vrot.lane.b32.xlu1 %v2738_v52, %s2373_s1 }
0x1187   :  { %1367 = vrot.lane.b32.xlu0 %v2740_v55, %s2373_s1 }
0x1188   :  { %1314 = vrot.lane.b32.xlu1 %v1091_v61, %s2374_s27 }
0x118b   :  { %1365 = vrot.lane.b32.xlu0 %v1092_v62, %s2374_s27 }
0x11fe   :  { %v1207_v23 = vpop.xlane.xlu0 %1206 }
0x11ff   :  { %2312 = vrcp.f32 %v1207_v23 }
0x1200   :  { %v1210_v24 = vpop.xlane.xlu1 %1209 }
0x1201   :  { %2314 = vrcp.f32 %v1210_v24 }
0x1202   :  { %v1368_v34 = vpop.permute.xlu0 %1367 }
0x1203   :  { %v1373_v39 = vsel %vm309_vm1, %v1368_v34, 0 }
0x1204   :  { %v1317_v30 = vpop.permute.xlu1 %1316 }
0x1205   :  { %v1322_v35 = vsel %vm309_vm1, %v1317_v30, 0 }
0x1206   :  { %v1366_v41 = vpop.permute.xlu0 %1365 }
0x1208   :  { %v1315_v40 = vpop.permute.xlu1 %1314 }
0x1209   :  { %v2313_v27 = vpop.eup %2312 }
0x120a   :  { %v1212_v28 = vmul.f32 %v2313_v27, %v2309_v19  ;;  %v1990_v19 = vld [vmem:[%s2914_s4 + $0x28] sm:$0xff] }
0x120b   :  { %v2315_v29 = vpop.eup %2314  ;;  %v1551_v20 = vpack.c.bf16 %v1990_v19, %v1989_v36 }
0x120c   :  { %v1214_v31 = vmul.f32 %v2315_v29, %v2311_v21  ;;  %v1215_v32 = vpack.c.bf16 %v1212_v28, %v1212_v28  ;;  %v1991_v21 = vld [vmem:[%s2914_s4 + $0x30] sm:$0xff] }
0x120d   :  { %v1552_v23 = vpack.c.bf16 %v1992_v22, %v1991_v21  ;;  %v1999_v21 = vld [vmem:[%s2915_s5 + $0x60] sm:$0xff]  ;;  %v2000_v22 = vld [vmem:[%s2915_s5 + $0x68] sm:$0xff] }
0x120e   :  { %2175 = vmatmul.mubr.msk.bf16.vlgmr.msra.gmra.mrb[24].mxu0 %vm405_vm2, %v1215_v32  ;;  %v1216_v37 = vpack.c.bf16 %v1214_v31, %v1214_v31 }
0x120f   :  { %2185 = vmatpush3.bf16.xpose.msra.mxu0 %v1322_v35  ;;  %2186 = vmatprep.mubr.msk.bf16.mxu0 %vm2371_vm0, %v2367_v10 }
0x1210   :  { %2181 = vmatmul.mubr.msk.bf16.vlgmr.msra.gmra.mrb[40].mxu1 %vm405_vm2, %v1216_v37  ;;  %2196 = vmatprep.subr.bf16.mxu0 %v2367_v10 }
0x1211   :  { %2191 = vmatpush3.bf16.xpose.msra.mxu1 %v1373_v39  ;;  %2192 = vmatprep.mubr.msk.bf16.mxu1 %vm2371_vm0, %v2367_v10 }
0x1212   :  { %2202 = vmatprep.subr.bf16.mxu1 %v2367_v10 }
0x1216   :  { %2187 = vmatmul.mubr.msk.bf16.vlgmr.msra.gmra.mrb[28].mxu0 %vm309_vm1, %v1315_v40 }
0x1217   :  { %2198 = vmatprep.mubr.msk.bf16.mxu0 %vm2371_vm0, %v2367_v10 }
0x1218   :  { %2193 = vmatmul.mubr.msk.bf16.vlgmr.msra.gmra.mrb[44].mxu1 %vm309_vm1, %v1366_v41 }
0x1219   :  { %2204 = vmatprep.mubr.msk.bf16.mxu1 %vm2371_vm0, %v2367_v10 }
0x12e1   :  { %v2792_v42 = vpop.f32.mrb[24].mxu0 }
0x12e2   :  { %v2176_v45 = vpop.f32.mrb[25].mxu0 }
0x12e3   :  { %v1262_v46 = vpop.f32.mrb[26].mxu0  ;;  %v2794_v47 = vpop.f32.mrb[40].mxu1 }
0x12e4   :  { %v2177_v48 = vpop.f32.mrb[27].mxu0  ;;  %v2182_v50 = vpop.f32.mrb[41].mxu1 }
0x12e5   :  { %v1310_v51 = vpop.f32.mrb[42].mxu1  ;;  %v1993_v48 = vld [vmem:[#allocation2 + $0x5] ss:$0 sm:$0xff] }
0x12e6   :  { %v2183_v53 = vpop.f32.mrb[43].mxu1 }
0x12e9   :  { %v1358_v54 = vpop.f32.mrb[28].mxu0 }
0x12ea   :  { %v1359_v56 = vadd.f32 %v1358_v54, %v2578_v57  ;;  %v2188_v49 = vpop.f32.mrb[29].mxu0 }
0x12eb   :  { %v1361_v58 = vpop.f32.mrb[30].mxu0  ;;  %v1409_v59 = vpop.f32.mrb[44].mxu1 }
0x12ec   :  { %v1410_v60 = vadd.f32 %v1409_v59, %v2582_v38  ;;  %v2189_v33 = vpop.f32.mrb[31].mxu0  ;;  %v2194_v61 = vpop.f32.mrb[45].mxu1  ;;  %v1415_v62 = vsel %vm405_vm2, %v1359_v56, -inf }
0x12ed   :  { %1416 = vmax.xlane.f32.xlu1 %v1415_v62  ;;  %v1412_v63 = vpop.f32.mrb[46].mxu1 }
0x12ee   :  { %v2195_v0 = vpop.f32.mrb[47].mxu1  ;;  %v1418_v1 = vsel %vm405_vm2, %v1410_v60, -inf }
0x12ef   :  { %1419 = vmax.xlane.f32.xlu0 %v1418_v1 }
0x137a   :  { %v1417_v25 = vpop.xlane.xlu1 %1416 }
0x137b   :  { %v1421_v26 = vsub.f32 %v1359_v56, %v1417_v25 }
0x137c   :  { %v1420_v2 = vpop.xlane.xlu0 %1419 }
0x137d   :  { %v1423_v3 = vmul.f32 1.442695, %v1421_v26  ;;  %v1422_v57 = vsub.f32 %v1410_v60, %v1420_v2  ;;  %v1996_v2 = vld [vmem:[%s2915_s5 + $0x48] sm:$0xff] }
0x137f   :  { %2316 = vpow2.f32 %v1423_v3  ;;  %v1425_v4 = vmul.f32 1.442695, %v1422_v57  ;;  %v1997_v57 = vld [vmem:[%s2915_s5 + $0x50] sm:$0xff] }
0x1381   :  { %2318 = vpow2.f32 %v1425_v4  ;;  %v1998_v4 = vld [vmem:[%s2915_s5 + $0x58] sm:$0xff] }
0x1389   :  { %v2317_v5 = vpop.eup %2316 }
0x138a   :  { %v1427_v38 = vsel %vm405_vm2, %v2317_v5, 0.0 }
0x138b   :  { %v2319_v6 = vpop.eup %2318  ;;  %1428 = vadd.xlane.f32.xlu0 %v1427_v38  ;;  %v2003_v38 = vld [vmem:[#allocation2 + $0x6] ss:$0 sm:$0xff] }
0x138c   :  { %v1430_v7 = vsel %vm405_vm2, %v2319_v6, 0.0 }
0x138d   :  { %1431 = vadd.xlane.f32.xlu1 %v1430_v7 }
0x139e   :  { %1487 = vrot.lane.b32.xlu1 %v2740_v55, %s2375_s28 }
0x13a1   :  { %1439 = vrot.lane.b32.xlu0 %v2738_v52, %s2375_s28 }
0x1418   :  { %v1429_v8 = vpop.xlane.xlu0 %1428 }
0x1419   :  { %2320 = vrcp.f32 %v1429_v8 }
0x141a   :  { %v1432_v9 = vpop.xlane.xlu1 %1431 }
0x141b   :  { %2322 = vrcp.f32 %v1432_v9 }
0x141c   :  { %v1440_v11 = vpop.permute.xlu0 %1439 }
0x141d   :  { %v1445_v12 = vsel %vm435_vm3, %v1440_v11, 0 }
0x141e   :  { %v1488_v13 = vpop.permute.xlu1 %1487  ;;  %2197 = vmatpush3.bf16.msra.mxu0 %v1445_v12 }
0x141f   :  { %v1493_v14 = vsel %vm435_vm3, %v1488_v13, 0  ;;  %2208 = vmatprep.subr.bf16.mxu0 %v2367_v10 }
0x1420   :  { %2203 = vmatpush3.bf16.msra.mxu1 %v1493_v14 }
0x1421   :  { %2216 = vmatprep.subr.bf16.mxu1 %v2367_v10 }
0x1423   :  { %v2321_v55 = vpop.eup %2320 }
0x1424   :  { %v1434_v15 = vmul.f32 %v2321_v55, %v2317_v5  ;;  %v1647_v5 = vpack.c.bf16 %v1998_v4, %v1997_v57 }
0x1425   :  { %v2323_v16 = vpop.eup %2322 }
0x1426   :  { %v1436_v52 = vmul.f32 %v2323_v16, %v2319_v6  ;;  %v1437_v17 = vpack.c.bf16 %v1434_v15, %v1434_v15 }
0x1428   :  { %2199 = vmatmul.mubr.msk.bf16.vlgmr.msra.gmra.mrb[32].mxu0 %vm405_vm2, %v1437_v17  ;;  %v1438_v18 = vpack.c.bf16 %v1436_v52, %v1436_v52 }
0x1429   :  { %2212 = vmatprep.mubr.msk.bf16.mxu0 %vm2371_vm0, %v2367_v10  ;;  %2209 = vmatpush3.bf16.msra.mxu0 %v1551_v20 }
0x142a   :  { %2205 = vmatmul.mubr.msk.bf16.vlgmr.msra.gmra.mrb[48].mxu1 %vm405_vm2, %v1438_v18  ;;  %2210 = vmatprep.subr.bf16.mxu0 %v2367_v10 }
0x142b   :  { %2220 = vmatprep.mubr.msk.bf16.mxu1 %vm2371_vm0, %v2367_v10 }
0x142d   :  { %2211 = vmatpush3.bf16.msra.mxu0 %v1552_v23  ;;  %v1653_v23 = vpack.c.bf16 %v2000_v22, %v1999_v21 }
0x142e   :  { %2224 = vmatprep.subr.bf16.mxu0 %v2367_v10 }
0x14fb   :  { %v1481_v24 = vpop.f32.mrb[32].mxu0 }
0x14fc   :  { %v2200_v27 = vpop.f32.mrb[33].mxu0 }
0x14fd   :  { %v1484_v28 = vpop.f32.mrb[34].mxu0  ;;  %v1529_v29 = vpop.f32.mrb[48].mxu1  ;;  %v2002_v27 = vld [vmem:[%s2915_s5 + $0x78] sm:$0xff] }
0x14fe   :  { %v2270_v30 = vpack.i.bf16 %v1529_v29, %v1481_v24  ;;  %v2201_v31 = vpop.f32.mrb[35].mxu0  ;;  %v2206_v32 = vpop.f32.mrb[49].mxu1  ;;  %v2001_v24 = vld [vmem:[%s2915_s5 + $0x70] sm:$0xff]  ;;  %v1732_v28 = vsel %vm940_vm4, %v1653_v23, 0 }
0x14ff   :  { %v1532_v34 = vpop.f32.mrb[50].mxu1  ;;  %v1654_v29 = vpack.c.bf16 %v2002_v27, %v2001_v24 }
0x1500   :  { %2271 = vrot.lane.b32.xlu1 %v2270_v30, %s2376_s14  ;;  %v2207_v35 = vpop.f32.mrb[51].mxu1 }
0x1501   :  { %v1735_v30 = vsel %vm940_vm4, %v1654_v29, 0 }
0x1572   :  { %v2272_v37 = vpop.permute.xlu1 %2271 }
0x1573   :  { %v2274_v39 = vunpack.i.h.bf16 %v2272_v37  ;;  %v2273_v40 = vunpack.i.l.bf16 %v2272_v37 }
0x1575   :  { %v1544_v41 = vsel %vm309_vm1, %v2794_v47, %v2274_v39  ;;  %v1543_v45 = vsel %vm309_vm1, %v2792_v42, %v2273_v40 }
0x1576   :  { %v1545_v46 = vpack.c.bf16 %v1544_v41, %v1543_v45 }
0x1578   :  { %2213 = vmatmul.mubr.msk.bf16.vlgmr.msra.gmra.mrb[36].mxu0 %vm169_vm15, %v1545_v46 }
0x1579   :  { %2228 = vmatprep.mubr.msk.bf16.mxu0 %vm2371_vm0, %v2367_v10  ;;  %2225 = vmatpush3.bf16.xpose.msra.mxu0 %v1732_v28 }
0x157a   :  { %2226 = vmatprep.subr.bf16.mxu0 %v2367_v10 }
0x1581   :  { %2227 = vmatpush3.bf16.xpose.msra.mxu0 %v1735_v30 }
0x164b   :  { %v1595_v50 = vpop.f32.mrb[36].mxu0 }
0x164c   :  { %v1596_v51 = vadd.f32 %v1993_v48, %v1595_v50  ;;  %v2214_v53 = vpop.f32.mrb[37].mxu0 }
0x164d   :  { %v1598_v54 = vpop.f32.mrb[38].mxu0 }
0x164e   :  { %v1599_v56 = vadd.f32 %v1993_v48, %v1598_v54  ;;  %v2215_v49 = vpop.f32.mrb[39].mxu0  ;;  %v1602_v58 = vadd.f32 %v1596_v51, %v2729_v43 }
0x1650   :  { %v1604_v47 = vsel %vm169_vm15, %v1602_v58, 0.0  ;;  %v1603_v59 = vadd.f32 %v1599_v56, %v2731_v44  ;;  %v1995_v44 = vld [vmem:[%s2915_s5 + $0x40] sm:$0xff] }
0x1651   :  { %1605 = vadd.xlane.f32.xlu0 %v1604_v47  ;;  %v1646_v3 = vpack.c.bf16 %v1996_v2, %v1995_v44 }
0x1652   :  { %v1607_v42 = vsel %vm169_vm15, %v1603_v59, 0.0 }
0x1653   :  { %1608 = vadd.xlane.f32.xlu1 %v1607_v42  ;;  %2217 = vmatpush3.bf16.msra.mxu1 %v1646_v3 }
0x1654   :  { %2218 = vmatprep.subr.bf16.mxu1 %v2367_v10 }
0x1657   :  { %2219 = vmatpush3.bf16.msra.mxu1 %v1647_v5 }
0x1658   :  { %2232 = vmatprep.subr.bf16.mxu1 %v2367_v10 }
0x1664   :  { %1631 = vrot.lane.b32.xlu1 %v1993_v48, %s2369_s2 }
0x1668   :  { %1725 = vrot.lane.b32.xlu1 %v2003_v38, %s2370_s17 }
0x16de   :  { %v1606_v60 = vpop.xlane.xlu0 %1605 }
0x16df   :  { %v1610_v33 = vmul.f32 0.03125, %v1606_v60 }
0x16e0   :  { %v1609_v61 = vpop.xlane.xlu1 %1608 }
0x16e1   :  { %v1612_v62 = vsub.f32 %v1602_v58, %v1610_v33  ;;  %v1611_v63 = vmul.f32 0.03125, %v1609_v61 }
0x16e3   :  { %v1613_v0 = vsub.f32 %v1603_v59, %v1611_v63  ;;  %v1614_v1 = vmul.f32 %v1612_v62, %v1612_v62 }
0x16e4   :  { %v1632_v55 = vpop.permute.xlu1 %1631 }
0x16e5   :  { %v1616_v25 = vsel %vm169_vm15, %v1614_v1, 0.0  ;;  %v1615_v43 = vmul.f32 %v1613_v0, %v1613_v0 }
0x16e6   :  { %1617 = vadd.xlane.f32.xlu0 %v1616_v25 }
0x16e7   :  { %v1619_v26 = vsel %vm169_vm15, %v1615_v43, 0.0 }
0x16e8   :  { %v1726_v63 = vpop.permute.xlu1 %1725 }
0x16ea   :  { %1620 = vadd.xlane.f32.xlu0 %v1619_v26 }
0x1700   :  { %1636 = vrot.lane.b32.xlu0 %v1993_v48, %s2370_s17 }
0x1773   :  { %v1618_v6 = vpop.xlane.xlu0 %1617 }
0x1774   :  { %v1622_v7 = vmul.f32 0.03125, %v1618_v6 }
0x1776   :  { %v1624_v8 = vadd.f32 1e-05, %v1622_v7 }
0x1777   :  { %v1621_v9 = vpop.xlane.xlu0 %1620 }
0x1778   :  { %2324 = vrsqrt.f32 %v1624_v8  ;;  %v1623_v11 = vmul.f32 0.03125, %v1621_v9 }
0x177a   :  { %v1625_v12 = vadd.f32 1e-05, %v1623_v11 }
0x177b   :  { %v1637_v17 = vpop.permute.xlu0 %1636 }
0x177c   :  { %2326 = vrsqrt.f32 %v1625_v12 }
0x1782   :  { %v2325_v13 = vpop.eup %2324 }
0x1783   :  { %v1628_v14 = vmul.f32 %v2325_v13, %v1612_v62 }
0x1785   :  { %v1634_v52 = vmul.f32 %v1632_v55, %v1628_v14 }
0x1786   :  { %v2327_v15 = vpop.eup %2326 }
0x1787   :  { %v1629_v16 = vmul.f32 %v2327_v15, %v1613_v0  ;;  %v1639_v36 = vadd.f32 %v1637_v17, %v1634_v52  ;;  %v1819_v15 = vld [vmem:[%s2917_s7] sm:$0xff] }
0x1789   :  { %v1635_v18 = vmul.f32 %v1632_v55, %v1629_v16  ;;  %v2006_v55 = vld [vmem:[#allocation2 + $0x7] ss:$0 sm:$0xff]  ;;  %v1820_v16 = vld [vmem:[%s2917_s7 + $0x8] sm:$0xff] }
0x178a   :  { %v1823_v52 = vpack.c.bf16 %v1820_v16, %v1819_v15 }
0x178b   :  { %v1640_v19 = vadd.f32 %v1637_v17, %v1635_v18  ;;  %v1821_v17 = vld [vmem:[%s2917_s7 + $0x10] sm:$0xff]  ;;  %v1822_v18 = vld [vmem:[%s2917_s7 + $0x18] sm:$0xff] }
0x178d   :  { %v1655_v20 = vpack.c.bf16 %v1640_v19, %v1639_v36 }
0x178f   :  { %2221 = vmatmul.mubr.msk.bf16.vlgmr.msra.gmra.mrb[52].mxu1 %vm169_vm15, %v1655_v20 }
0x1790   :  { %2236 = vmatprep.mubr.msk.bf16.mxu1 %vm2371_vm0, %v2367_v10  ;;  %2233 = vmatpush3.bf16.msra.mxu1 %v1823_v52 }
0x1791   :  { %2234 = vmatprep.subr.bf16.mxu1 %v2367_v10 }
0x1862   :  { %v1698_v31 = vpop.f32.mrb[52].mxu1 }
0x1863   :  { %v1699_v32 = vadd.f32 %v2003_v38, %v1698_v31  ;;  %v2222_v34 = vpop.f32.mrb[53].mxu1 }
0x1864   :  { %v1701_v35 = vpop.f32.mrb[54].mxu1 }
0x1865   :  { %v1707_v37 = vmul.f32 0.044715, %v1699_v32  ;;  %v1702_v39 = vadd.f32 %v2003_v38, %v1701_v35  ;;  %v2223_v40 = vpop.f32.mrb[55].mxu1  ;;  %v1705_v59 = vmul.f32 0.5, %v1699_v32 }
0x1867   :  { %v1709_v41 = vmul.f32 %v1707_v37, %v1699_v32  ;;  %v1708_v45 = vmul.f32 0.044715, %v1702_v39  ;;  %v1706_v42 = vmul.f32 0.5, %v1702_v39 }
0x1869   :  { %v1711_v46 = vmul.f32 %v1709_v41, %v1699_v32  ;;  %v1710_v48 = vmul.f32 %v1708_v45, %v1702_v39 }
0x186b   :  { %v1713_v50 = vadd.f32 %v1711_v46, %v1699_v32  ;;  %v1712_v51 = vmul.f32 %v1710_v48, %v1702_v39 }
0x186d   :  { %v1715_v53 = vmul.f32 0.7978846, %v1713_v50  ;;  %v1714_v54 = vadd.f32 %v1712_v51, %v1702_v39 }
0x186f   :  { %2328 = vtanh.f32 %v1715_v53  ;;  %v1716_v56 = vmul.f32 0.7978846, %v1714_v54 }
0x1871   :  { %2330 = vtanh.f32 %v1716_v56 }
0x1879   :  { %v2329_v49 = vpop.eup %2328 }
0x187a   :  { %v1719_v58 = vadd.f32 1.0, %v2329_v49 }
0x187b   :  { %v2331_v47 = vpop.eup %2330 }
0x187c   :  { %v1720_v60 = vadd.f32 1.0, %v2331_v47  ;;  %v1721_v33 = vmul.f32 %v1719_v58, %v1705_v59 }
0x187e   :  { %v1722_v61 = vmul.f32 %v1720_v60, %v1706_v42 }
0x1880   :  { %v1723_v62 = vpack.c.bf16 %v1722_v61, %v1721_v33 }
0x1882   :  { %2229 = vmatmul.mubr.msk.bf16.vlgmr.msra.gmra.mrb[40].mxu0 %vm940_vm4, %v1723_v62 }
0x1955   :  { %v1771_v0 = vpop.f32.mrb[40].mxu0 }
0x1956   :  { %v1772_v1 = vadd.f32 %v1771_v0, %v1726_v63  ;;  %v2230_v25 = vpop.f32.mrb[41].mxu0 }
0x1957   :  { %v1774_v43 = vpop.f32.mrb[42].mxu0 }
0x1958   :  { %v1775_v26 = vadd.f32 %v1774_v43, %v1726_v63  ;;  %v2231_v44 = vpop.f32.mrb[43].mxu0  ;;  %v1778_v2 = vadd.f32 %v1772_v1, %v1639_v36  ;;  %v1824_v36 = vpack.c.bf16 %v1822_v18, %v1821_v17 }
0x195a   :  { %v1781_v3 = vsel %vm169_vm15, %v1778_v2, 0.0  ;;  %v1779_v57 = vadd.f32 %v1775_v26, %v1640_v19  ;;  %2235 = vmatpush3.bf16.msra.mxu1 %v1824_v36  ;;  %v2007_v19 = vld [vmem:[#allocation2 + $0x9] ss:$0 sm:$0xff] }
0x195b   :  { %1782 = vadd.xlane.f32.xlu0 %v1781_v3  ;;  %2240 = vmatprep.subr.bf16.mxu1 %v2367_v10 }
0x195c   :  { %v1784_v4 = vsel %vm169_vm15, %v1779_v57, 0.0 }
0x195d   :  { %1785 = vadd.xlane.f32.xlu1 %v1784_v4 }
0x19e8   :  { %v1783_v5 = vpop.xlane.xlu0 %1782 }
0x19e9   :  { %v1787_v38 = vmul.f32 0.03125, %v1783_v5 }
0x19ea   :  { %v1786_v6 = vpop.xlane.xlu1 %1785 }
0x19eb   :  { %v1789_v7 = vsub.f32 %v1778_v2, %v1787_v38  ;;  %v1788_v8 = vmul.f32 0.03125, %v1786_v6 }
0x19ed   :  { %v1790_v9 = vsub.f32 %v1779_v57, %v1788_v8  ;;  %v1791_v11 = vmul.f32 %v1789_v7, %v1789_v7 }
0x19ef   :  { %v1793_v12 = vsel %vm169_vm15, %v1791_v11, 0.0  ;;  %v1792_v13 = vmul.f32 %v1790_v9, %v1790_v9 }
0x19f0   :  { %1794 = vadd.xlane.f32.xlu1 %v1793_v12 }
0x19f1   :  { %v1796_v14 = vsel %vm169_vm15, %v1792_v13, 0.0 }
0x19f2   :  { %1797 = vadd.xlane.f32.xlu0 %v1796_v14 }
0x1a01   :  { %1887 = vrot.lane.b32.xlu1 %v1823_v52, %s2369_s2 }
0x1a05   :  { %1889 = vrot.lane.b32.xlu1 %v1824_v36, %s2369_s2 }
0x1a08   :  { %1814 = vrot.lane.b32.xlu0 %v2006_v55, %s2369_s2 }
0x1a0c   :  { %1894 = vrot.lane.b32.xlu0 %v2007_v19, %s2369_s2 }
0x1a7d   :  { %v1795_v20 = vpop.xlane.xlu1 %1794 }
0x1a7e   :  { %v1799_v21 = vmul.f32 0.03125, %v1795_v20 }
0x1a7f   :  { %v1798_v22 = vpop.xlane.xlu0 %1797 }
0x1a80   :  { %v1801_v23 = vadd.f32 1e-05, %v1799_v21  ;;  %v1800_v24 = vmul.f32 0.03125, %v1798_v22 }
0x1a81   :  { %v1888_v53 = vpop.permute.xlu1 %1887 }
0x1a82   :  { %2332 = vrsqrt.f32 %v1801_v23  ;;  %v1802_v27 = vadd.f32 1e-05, %v1800_v24 }
0x1a83   :  { %v1815_v31 = vpop.permute.xlu0 %1814 }
0x1a84   :  { %2334 = vrsqrt.f32 %v1802_v27 }
0x1a85   :  { %v1890_v54 = vpop.permute.xlu1 %1889 }
0x1a87   :  { %v1895_v33 = vpop.permute.xlu0 %1894 }
0x1a8c   :  { %v2333_v28 = vpop.eup %2332 }
0x1a8d   :  { %v1805_v29 = vmul.f32 %v2333_v28, %v1789_v7 }
0x1a8e   :  { %v2335_v30 = vpop.eup %2334 }
0x1a8f   :  { %v1806_v32 = vmul.f32 %v2335_v30, %v1790_v9  ;;  %v1811_v34 = vmul.f32 %v2006_v55, %v1805_v29 }
0x1a91   :  { %v1812_v35 = vmul.f32 %v2006_v55, %v1806_v32  ;;  %v1817_v37 = vadd.f32 %v1815_v31, %v1811_v34 }
0x1a93   :  { %v1818_v39 = vadd.f32 %v1815_v31, %v1812_v35  ;;  %v1825_v40 = vpack.c.bf16 %v1817_v37, %v1817_v37 }
0x1a95   :  { %v1826_v41 = vpack.c.bf16 %v1818_v39, %v1818_v39  ;;  %v1834_v46 = vunpack.c.l.b16 %v1825_v40 }
0x1a97   :  { %v1835_v45 = vunpack.c.l.b16 %v1826_v41 }
0x1a99   :  { %v1836_v48 = vrot.slane %v1835_v45, 7 }
0x1a9b   :  { %v1838_v50 = vsel %vm1837_vm5, %v1836_v48, %v1834_v46 }
0x1a9c   :  { %v1839_v51 = vpack.c.b16 %v1838_v50, %v1838_v50 }
0x1a9e   :  { %2237 = vmatmul.mubr.msk.bf16.vlgmr.msra.gmra.mrb[56].mxu1 %vm169_vm15, %v1839_v51 }
0x1a9f   :  { %2244 = vmatprep.mubr.msk.bf16.mxu1 %vm2371_vm0, %v2367_v10  ;;  %2241 = vmatpush3.bf16.msra.mxu1 %v1888_v53 }
0x1aa0   :  { %2242 = vmatprep.subr.bf16.mxu1 %v2367_v10 }
0x1aa3   :  { %2243 = vmatpush3.bf16.msra.mxu1 %v1890_v54 }
0x1b71   :  { %v1877_v56 = vpop.f32.mrb[56].mxu1 }
0x1b72   :  { %v1878_v49 = vadd.f32 %v2007_v19, %v1877_v56  ;;  %v2238_v58 = vpop.f32.mrb[57].mxu1 }
0x1b73   :  { %v1880_v47 = vpop.f32.mrb[58].mxu1 }
0x1b74   :  { %2336 = vtanh.f32 %v1878_v49  ;;  %v2239_v59 = vpop.f32.mrb[59].mxu1 }
0x1b7e   :  { %v2337_v42 = vpop.eup %2336 }
0x1b7f   :  { %v1884_v60 = vpack.c.bf16 %v2337_v42, %v2337_v42 }
0x1b81   :  { %2245 = vmatmul.mubr.msk.bf16.vlgmr.msra.gmra.mrb[60].mxu1 %vm169_vm15, %v1884_v60 }
0x1c54   :  { %v1934_v61 = vpop.f32.mrb[60].mxu1 }
0x1c55   :  { %v1935_v62 = vadd.f32 %v1934_v61, %v1895_v33  ;;  %v2246_v63 = vpop.f32.mrb[61].mxu1 }
0x1c56   :  { %v1937_v0 = vpop.f32.mrb[62].mxu1 }
0x1c57   :  { %1941 = vst.msk [vmem:[%s2918_s8] sm:$0x3] %vm1940_vm6, %v1935_v62  ;;  %v2247_v10 = vpop.f32.mrb[63].mxu1 }
0x1c58   :  { %1946 = vsyncpa [#allocation3], 1 }

</bundles_post_ra>
